<compile_context>
chip_gen: v5e
topology: v5e:2x2
jax: 0.10.0
libtpu: 0.0.40
codegen_flags: <defaults>
</compile_context>

<pallas_src>
import functools

import jax
import jax.numpy as jnp
from jax.experimental import pallas as pl
from jax.experimental.pallas import tpu as pltpu


# --------------------------------------------------------------------------- #
# In-kernel helpers (operate on f32 values already resident in vregs)
# --------------------------------------------------------------------------- #
def _layernorm(x, g, b, eps):
    mu = jnp.mean(x, axis=-1, keepdims=True)
    var = jnp.mean(jnp.square(x - mu), axis=-1, keepdims=True)
    return (x - mu) * jax.lax.rsqrt(var + eps) * g + b


def _stable_sigmoid(y):
    # Never exponentiates a large positive number -> no inf intermediates.
    z = jnp.exp(-jnp.abs(y))
    return jnp.where(y >= 0.0, 1.0 / (1.0 + z), z / (1.0 + z))


def _mosaic_params(dimension_semantics, *arrays):
    """CompilerParams with an explicit VMEM budget.

    The pipeline double-buffers every input (even constant-index weights), so the
    default 16/32 MiB scoped limit is reached long before physical VMEM at
    BERT-scale shapes.  Budget 2x operand bytes + headroom, capped v7x-safe.
    """
    nbytes = sum(int(a.size) * a.dtype.itemsize for a in arrays)
    limit = int(min(max(2 * nbytes + (8 << 20), 16 << 20), 48 << 20))
    return pltpu.CompilerParams(dimension_semantics=dimension_semantics,
                                vmem_limit_bytes=limit)


# --------------------------------------------------------------------------- #
# Kernel 1: fused embedding add + LayerNorm  (bf16 word gather in, bf16 out)
# --------------------------------------------------------------------------- #
def _embed_ln_kernel(w_ref, pt_ref, g_ref, b_ref, o_ref, *, eps):
    x = w_ref[0].astype(jnp.float32) + pt_ref[...]           # (S, H) f32
    o_ref[0] = _layernorm(x, g_ref[...], b_ref[...], eps).astype(o_ref.dtype)


def pallas_embed_layernorm(word, pos_type, gamma, beta, eps=1e-12):
    B, S, H = word.shape
    return pl.pallas_call(
        functools.partial(_embed_ln_kernel, eps=eps),
        out_shape=jax.ShapeDtypeStruct((B, S, H), jnp.bfloat16),
        grid=(B,),
        in_specs=[
            pl.BlockSpec((1, S, H), lambda i: (i, 0, 0)),
            pl.BlockSpec((S, H), lambda i: (0, 0)),
            pl.BlockSpec((1, H), lambda i: (0, 0)),
            pl.BlockSpec((1, H), lambda i: (0, 0)),
        ],
        out_specs=pl.BlockSpec((1, S, H), lambda i: (i, 0, 0)),
        compiler_params=_mosaic_params(("parallel",), word, pos_type, gamma, beta),
    )(word, pos_type, gamma, beta)


# --------------------------------------------------------------------------- #
# Kernel 2: fused attention block
#   one wide QKV matmul + per-head softmax attention + one output projection
#   + bias + residual + LayerNorm, all in VMEM, one launch per layer.
# --------------------------------------------------------------------------- #
def _attn_block_kernel(x_ref, wqkv_ref, bqkv_ref, wo_ref, bo_ref, g_ref, b_ref,
                       o_ref, *, heads, head_dim, eps):
    x = x_ref[0]                                              # (S, H) bf16
    xf = x.astype(jnp.float32)
    H = heads * head_dim

    # One full-width MXU matmul for Q|K|V together (1/sqrt(Dh) pre-folded into
    # the Q columns of wqkv/bqkv at init).
    qkv = (jnp.dot(x, wqkv_ref[...], preferred_element_type=jnp.float32)
           + bqkv_ref[...]).astype(jnp.bfloat16)              # (S, 3H)

    # TODO(synk): at real sequence lengths, block over KV (flash-style online
    # softmax) and move this static head loop into a lax.fori_loop to bound
    # vreg live ranges.
    ctxs = []
    for h in range(heads):
        q = qkv[:, h * head_dim:(h + 1) * head_dim]
        k = qkv[:, H + h * head_dim:H + (h + 1) * head_dim]
        v = qkv[:, 2 * H + h * head_dim:2 * H + (h + 1) * head_dim]
        # scores (S, S): contraction on the head dim, no explicit transpose.
        s = jax.lax.dot_general(q, k, (((1,), (1,)), ((), ())),
                                preferred_element_type=jnp.float32)
        m = jnp.max(s, axis=-1, keepdims=True)
        p = jnp.exp(s - m)
        p = p * pl.reciprocal(jnp.sum(p, axis=-1, keepdims=True), approx=True)
        ctxs.append(jnp.dot(p.astype(jnp.bfloat16), v,
                            preferred_element_type=jnp.float32))   # (S, Dh)

    # Merge heads in VMEM, then a single full-K (S,H)@(H,H) output projection.
    ctx = jnp.concatenate(ctxs, axis=-1).astype(jnp.bfloat16)      # (S, H)
    y = jnp.dot(ctx, wo_ref[...], preferred_element_type=jnp.float32)

    r = y + bo_ref[...] + xf                                  # bias + residual
    o_ref[0] = _layernorm(r, g_ref[...], b_ref[...], eps).astype(o_ref.dtype)


def pallas_attention_block(x, wqkv, bqkv, wo, bo, g, b, heads, eps=1e-12):
    B, S, H = x.shape
    head_dim = H // heads

    def full2(a):
        return pl.BlockSpec(a.shape, lambda i: (0, 0))

    return pl.pallas_call(
        functools.partial(_attn_block_kernel, heads=heads, head_dim=head_dim, eps=eps),
        out_shape=jax.ShapeDtypeStruct((B, S, H), jnp.bfloat16),
        grid=(B,),
        in_specs=[
            pl.BlockSpec((1, S, H), lambda i: (i, 0, 0)),
            full2(wqkv), full2(bqkv), full2(wo), full2(bo), full2(g), full2(b),
        ],
        out_specs=pl.BlockSpec((1, S, H), lambda i: (i, 0, 0)),
        compiler_params=_mosaic_params(("parallel",), x, wqkv, bqkv, wo, bo, g, b),
    )(x, wqkv, bqkv, wo, bo, g, b)


# --------------------------------------------------------------------------- #
# Kernel 3: fused FFN block (inter matmul + GELU + out matmul + residual + LN)
# --------------------------------------------------------------------------- #
def _ffn_block_kernel(x_ref, wi_ref, bi_ref, wo_ref, bo_ref, g_ref, b_ref, o_ref, *, eps):
    x = x_ref[0]                                              # (S, H) bf16
    h = jnp.dot(x, wi_ref[...], preferred_element_type=jnp.float32) + bi_ref[...]
    # TODO(synk): HF BERT uses exact erf-GELU; tanh approximation used here.
    h = jax.nn.gelu(h, approximate=True)
    y = jnp.dot(h.astype(jnp.bfloat16), wo_ref[...],
                preferred_element_type=jnp.float32) + bo_ref[...]
    r = y + x.astype(jnp.float32)
    o_ref[0] = _layernorm(r, g_ref[...], b_ref[...], eps).astype(o_ref.dtype)


def pallas_ffn_block(x, wi, bi, wo, bo, g, b, eps=1e-12):
    # TODO(synk): for BERT-large-class shapes on v7x, tile over `inter` with an
    # extra 'arbitrary' grid axis + f32 accumulator to stay inside 64 MiB VMEM.
    B, S, H = x.shape

    def full2(a):
        return pl.BlockSpec(a.shape, lambda i: (0, 0))

    return pl.pallas_call(
        functools.partial(_ffn_block_kernel, eps=eps),
        out_shape=jax.ShapeDtypeStruct((B, S, H), jnp.bfloat16),
        grid=(B,),
        in_specs=[
            pl.BlockSpec((1, S, H), lambda i: (i, 0, 0)),
            full2(wi), full2(bi), full2(wo), full2(bo), full2(g), full2(b),
        ],
        out_specs=pl.BlockSpec((1, S, H), lambda i: (i, 0, 0)),
        compiler_params=_mosaic_params(("parallel",), x, wi, bi, wo, bo, g, b),
    )(x, wi, bi, wo, bo, g, b)


# --------------------------------------------------------------------------- #
# Kernel 4: fused tail = pooler (tanh) + classifier + sigmoid  on the CLS slab
# --------------------------------------------------------------------------- #
def _head_kernel(cls_ref, wp_ref, bp_ref, wc_ref, bc_ref, o_ref, *, sigm):
    pooled = jnp.tanh(
        jnp.dot(cls_ref[...], wp_ref[...], preferred_element_type=jnp.float32)
        + bp_ref[...])
    logits = jnp.dot(pooled.astype(jnp.bfloat16), wc_ref[...],
                     preferred_element_type=jnp.float32) + bc_ref[...]
    o_ref[...] = _stable_sigmoid(logits) if sigm else logits


def pallas_head(cls_tok, wp, bp, wc, bc, sigm=True):
    # TODO(synk): small label_count forces masked lane stores; could fold this
    # epilogue into the last FFN kernel or pad L toward 128 at larger scales.
    B, H = cls_tok.shape
    L = wc.shape[1]

    def full2(a):
        return pl.BlockSpec(a.shape, lambda i: (0, 0))

    return pl.pallas_call(
        functools.partial(_head_kernel, sigm=sigm),
        out_shape=jax.ShapeDtypeStruct((B, L), jnp.float32),
        grid=(1,),
        in_specs=[full2(cls_tok), full2(wp), full2(bp), full2(wc), full2(bc)],
        out_specs=pl.BlockSpec((B, L), lambda i: (0, 0)),
        compiler_params=_mosaic_params(("arbitrary",), cls_tok, wp, bp, wc, bc),
    )(cls_tok, wp, bp, wc, bc)


# --------------------------------------------------------------------------- #
# Deterministic parameter init (synthetic BERT encoder + classifier)
# Weights stored in bf16 (MXU operands); biases / LN params in f32.
# Q/K/V are concatenated as a single (H, 3H) weight with 1/sqrt(Dh) folded into
# the Q columns; word embeddings stored bf16 (gather output feeds the LN kernel).
# --------------------------------------------------------------------------- #
def init_params(key, *, vocab, max_pos, H, heads, inter, layers, label_count):
    Dh = H // heads
    scale = 1.0 / float(Dh) ** 0.5
    keys = iter(jax.random.split(key, 6 * layers + 5))

    def w(shape):
        return jax.random.normal(next(keys), shape, jnp.float32) * 0.02

    params = {
        "word_emb": w((vocab, H)).astype(jnp.bfloat16),
        "pos_emb": w((max_pos, H)),
        "type_emb": w((2, H)),
        "emb_ln_g": jnp.ones((1, H), jnp.float32),
        "emb_ln_b": jnp.zeros((1, H), jnp.float32),
        "layers": [],
    }
    for _ in range(layers):
        wq = w((H, H)) * scale                  # softmax scale folded into Wq
        wk = w((H, H))
        wv = w((H, H))
        wqkv = jnp.concatenate([wq, wk, wv], axis=1).astype(jnp.bfloat16)  # (H, 3H)
        params["layers"].append({
            "wqkv": wqkv,
            "bqkv": jnp.zeros((1, 3 * H), jnp.float32),   # Q-part is pre-scaled too
            "wo": w((H, H)).astype(jnp.bfloat16),
            "bo": jnp.zeros((1, H), jnp.float32),
            "attn_ln_g": jnp.ones((1, H), jnp.float32),
            "attn_ln_b": jnp.zeros((1, H), jnp.float32),
            "wi": w((H, inter)).astype(jnp.bfloat16),
            "bi": jnp.zeros((1, inter), jnp.float32),
            "wo2": w((inter, H)).astype(jnp.bfloat16),
            "bo2": jnp.zeros((1, H), jnp.float32),
            "ffn_ln_g": jnp.ones((1, H), jnp.float32),
            "ffn_ln_b": jnp.zeros((1, H), jnp.float32),
        })
    params["wp"] = w((H, H)).astype(jnp.bfloat16)            # pooler
    params["bp"] = jnp.zeros((1, H), jnp.float32)
    params["wc"] = w((H, label_count)).astype(jnp.bfloat16)  # classifier
    params["bc"] = jnp.zeros((1, label_count), jnp.float32)
    return params


# --------------------------------------------------------------------------- #
# Forward pass == MlabelSimple.forward(encoder_input, sigm=True)
# --------------------------------------------------------------------------- #
def mlabel_forward(params, input_ids, sigm=True, heads=4):
    B, S = input_ids.shape
    assert S <= params["pos_emb"].shape[0], "sequence length exceeds position table"

    # Embedding gather kept as cheap XLA glue (no clean Pallas gather); bf16 stream.
    word = jnp.take(params["word_emb"], input_ids, axis=0)           # (B, S, H) bf16
    pos_type = params["pos_emb"][:S] + params["type_emb"][0]         # (S, H) f32

    x = pallas_embed_layernorm(word, pos_type,
                               params["emb_ln_g"], params["emb_ln_b"])

    for lp in params["layers"]:
        x = pallas_attention_block(x, lp["wqkv"], lp["bqkv"], lp["wo"], lp["bo"],
                                   lp["attn_ln_g"], lp["attn_ln_b"], heads=heads)
        x = pallas_ffn_block(x, lp["wi"], lp["bi"], lp["wo2"], lp["bo2"],
                             lp["ffn_ln_g"], lp["ffn_ln_b"])

    cls_tok = x[:, 0, :]                                             # [CLS], (B, H)
    return pallas_head(cls_tok, params["wp"], params["bp"],
                       params["wc"], params["bc"], sigm=sigm)


# --------------------------------------------------------------------------- #
if __name__ == "__main__":
    B, S, H, heads, inter, layers = 2, 8, 32, 4, 64, 2
    vocab, max_pos, label_count = 50, 16, 8

    root = jax.random.PRNGKey(0)
    k_params, k_ids = jax.random.split(root)

    params = init_params(k_params, vocab=vocab, max_pos=max_pos, H=H, heads=heads,
                         inter=inter, layers=layers, label_count=label_count)
    encoder_input = jax.random.randint(k_ids, (B, S), 0, vocab, dtype=jnp.int32)

    fwd = jax.jit(functools.partial(mlabel_forward, sigm=True, heads=heads))
    probs = jax.block_until_ready(fwd(params, encoder_input))

    assert probs.shape == (B, label_count)
    assert bool(jnp.all((probs >= 0.0) & (probs <= 1.0)))
    print("KERNEL_OK")
</pallas_src>

<mosaic_0001>
module attributes {stable_mosaic.version = 11 : i64} {
  func.func @_attn_block_kernel(%arg0: i32, %arg1: memref<1x8x32xbf16, #tpu.memory_space<vmem>>, %arg2: memref<32x96xbf16, #tpu.memory_space<vmem>>, %arg3: memref<1x96xf32, #tpu.memory_space<vmem>>, %arg4: memref<32x32xbf16, #tpu.memory_space<vmem>>, %arg5: memref<1x32xf32, #tpu.memory_space<vmem>>, %arg6: memref<1x32xf32, #tpu.memory_space<vmem>>, %arg7: memref<1x32xf32, #tpu.memory_space<vmem>>, %arg8: memref<1x8x32xbf16, #tpu.memory_space<vmem>>) attributes {dimension_semantics = [#tpu.dimension_semantics<parallel>], iteration_bounds = array<i64: 2>, scalar_prefetch = 0 : i64, scratch_operands = 0 : i64, tpu.core_type = #tpu.core_type<tc>, window_params = [{transform_indices = @transform_0, window_bounds = array<i64: 1, 8, 32>}, {pipeline_mode = #tpu.pipeline_mode<synchronous>, transform_indices = @transform_1, window_bounds = array<i64: 32, 96>}, {pipeline_mode = #tpu.pipeline_mode<synchronous>, transform_indices = @transform_2, window_bounds = array<i64: 1, 96>}, {pipeline_mode = #tpu.pipeline_mode<synchronous>, transform_indices = @transform_3, window_bounds = array<i64: 32, 32>}, {pipeline_mode = #tpu.pipeline_mode<synchronous>, transform_indices = @transform_4, window_bounds = array<i64: 1, 32>}, {pipeline_mode = #tpu.pipeline_mode<synchronous>, transform_indices = @transform_5, window_bounds = array<i64: 1, 32>}, {pipeline_mode = #tpu.pipeline_mode<synchronous>, transform_indices = @transform_6, window_bounds = array<i64: 1, 32>}, {transform_indices = @transform_7, window_bounds = array<i64: 1, 8, 32>}]} {
    %c0 = arith.constant 0 : index
    %c0_0 = arith.constant 0 : index
    %c0_1 = arith.constant 0 : index
    %0 = vector.load %arg1[%c0, %c0_0, %c0_1] : memref<1x8x32xbf16, #tpu.memory_space<vmem>>, vector<1x8x32xbf16>
    %1 = vector.shape_cast %0 : vector<1x8x32xbf16> to vector<8x32xbf16>
    %2 = arith.extf %1 : vector<8x32xbf16> to vector<8x32xf32>
    %c0_2 = arith.constant 0 : index
    %c0_3 = arith.constant 0 : index
    %3 = vector.load %arg2[%c0_2, %c0_3] : memref<32x96xbf16, #tpu.memory_space<vmem>>, vector<32x96xbf16>
    %cst = arith.constant dense<0.000000e+00> : vector<8x96xf32>
    %4 = tpu.matmul %1, %3, %cst {dimension_numbers = #tpu.dot_dimension_numbers<[1], [0], [0], [1], [0, 0, 1, 1], [], []>} : vector<8x32xbf16>, vector<32x96xbf16>, vector<8x96xf32> -> vector<8x96xf32>
    %c0_4 = arith.constant 0 : index
    %c0_5 = arith.constant 0 : index
    %5 = vector.load %arg3[%c0_4, %c0_5] : memref<1x96xf32, #tpu.memory_space<vmem>>, vector<1x96xf32>
    %6 = vector.broadcast %5 : vector<1x96xf32> to vector<8x96xf32>
    %7 = arith.addf %4, %6 : vector<8x96xf32>
    %8 = arith.truncf %7 : vector<8x96xf32> to vector<8x96xbf16>
    %9 = vector.extract_strided_slice %8 {offsets = [0, 0], sizes = [8, 8], strides = [1, 1]} : vector<8x96xbf16> to vector<8x8xbf16>
    %10 = vector.extract_strided_slice %8 {offsets = [0, 32], sizes = [8, 8], strides = [1, 1]} : vector<8x96xbf16> to vector<8x8xbf16>
    %11 = vector.extract_strided_slice %8 {offsets = [0, 64], sizes = [8, 8], strides = [1, 1]} : vector<8x96xbf16> to vector<8x8xbf16>
    %cst_6 = arith.constant dense<0.000000e+00> : vector<8x8xf32>
    %12 = tpu.matmul %9, %10, %cst_6 {dimension_numbers = #tpu.dot_dimension_numbers<[1], [1], [0], [0], [0, 0, 1, 0], [], []>} : vector<8x8xbf16>, vector<8x8xbf16>, vector<8x8xf32> -> vector<8x8xf32>
    %cst_7 = arith.constant dense<0xFF800000> : vector<8xf32>
    %13 = vector.multi_reduction <maximumf>, %12, %cst_7 [1] : vector<8x8xf32> to vector<8xf32>
    %14 = vector.shape_cast %13 : vector<8xf32> to vector<8x1xf32>
    %15 = vector.broadcast %14 : vector<8x1xf32> to vector<8x8xf32>
    %16 = arith.subf %12, %15 : vector<8x8xf32>
    %17 = math.exp %16 : vector<8x8xf32>
    %cst_8 = arith.constant dense<0.000000e+00> : vector<8xf32>
    %18 = vector.multi_reduction <add>, %17, %cst_8 [1] : vector<8x8xf32> to vector<8xf32>
    %19 = vector.shape_cast %18 : vector<8xf32> to vector<8x1xf32>
    %20 = tpu.reciprocal %19 {approx = true} : vector<8x1xf32> -> vector<8x1xf32>
    %21 = vector.broadcast %20 : vector<8x1xf32> to vector<8x8xf32>
    %22 = arith.mulf %17, %21 : vector<8x8xf32>
    %23 = arith.truncf %22 : vector<8x8xf32> to vector<8x8xbf16>
    %cst_9 = arith.constant dense<0.000000e+00> : vector<8x8xf32>
    %24 = tpu.matmul %23, %11, %cst_9 {dimension_numbers = #tpu.dot_dimension_numbers<[1], [0], [0], [1], [0, 0, 1, 1], [], []>} : vector<8x8xbf16>, vector<8x8xbf16>, vector<8x8xf32> -> vector<8x8xf32>
    %25 = vector.extract_strided_slice %8 {offsets = [0, 8], sizes = [8, 8], strides = [1, 1]} : vector<8x96xbf16> to vector<8x8xbf16>
    %26 = vector.extract_strided_slice %8 {offsets = [0, 40], sizes = [8, 8], strides = [1, 1]} : vector<8x96xbf16> to vector<8x8xbf16>
    %27 = vector.extract_strided_slice %8 {offsets = [0, 72], sizes = [8, 8], strides = [1, 1]} : vector<8x96xbf16> to vector<8x8xbf16>
    %cst_10 = arith.constant dense<0.000000e+00> : vector<8x8xf32>
    %28 = tpu.matmul %25, %26, %cst_10 {dimension_numbers = #tpu.dot_dimension_numbers<[1], [1], [0], [0], [0, 0, 1, 0], [], []>} : vector<8x8xbf16>, vector<8x8xbf16>, vector<8x8xf32> -> vector<8x8xf32>
    %cst_11 = arith.constant dense<0xFF800000> : vector<8xf32>
    %29 = vector.multi_reduction <maximumf>, %28, %cst_11 [1] : vector<8x8xf32> to vector<8xf32>
    %30 = vector.shape_cast %29 : vector<8xf32> to vector<8x1xf32>
    %31 = vector.broadcast %30 : vector<8x1xf32> to vector<8x8xf32>
    %32 = arith.subf %28, %31 : vector<8x8xf32>
    %33 = math.exp %32 : vector<8x8xf32>
    %cst_12 = arith.constant dense<0.000000e+00> : vector<8xf32>
    %34 = vector.multi_reduction <add>, %33, %cst_12 [1] : vector<8x8xf32> to vector<8xf32>
    %35 = vector.shape_cast %34 : vector<8xf32> to vector<8x1xf32>
    %36 = tpu.reciprocal %35 {approx = true} : vector<8x1xf32> -> vector<8x1xf32>
    %37 = vector.broadcast %36 : vector<8x1xf32> to vector<8x8xf32>
    %38 = arith.mulf %33, %37 : vector<8x8xf32>
    %39 = arith.truncf %38 : vector<8x8xf32> to vector<8x8xbf16>
    %cst_13 = arith.constant dense<0.000000e+00> : vector<8x8xf32>
    %40 = tpu.matmul %39, %27, %cst_13 {dimension_numbers = #tpu.dot_dimension_numbers<[1], [0], [0], [1], [0, 0, 1, 1], [], []>} : vector<8x8xbf16>, vector<8x8xbf16>, vector<8x8xf32> -> vector<8x8xf32>
    %41 = vector.extract_strided_slice %8 {offsets = [0, 16], sizes = [8, 8], strides = [1, 1]} : vector<8x96xbf16> to vector<8x8xbf16>
    %42 = vector.extract_strided_slice %8 {offsets = [0, 48], sizes = [8, 8], strides = [1, 1]} : vector<8x96xbf16> to vector<8x8xbf16>
    %43 = vector.extract_strided_slice %8 {offsets = [0, 80], sizes = [8, 8], strides = [1, 1]} : vector<8x96xbf16> to vector<8x8xbf16>
    %cst_14 = arith.constant dense<0.000000e+00> : vector<8x8xf32>
    %44 = tpu.matmul %41, %42, %cst_14 {dimension_numbers = #tpu.dot_dimension_numbers<[1], [1], [0], [0], [0, 0, 1, 0], [], []>} : vector<8x8xbf16>, vector<8x8xbf16>, vector<8x8xf32> -> vector<8x8xf32>
    %cst_15 = arith.constant dense<0xFF800000> : vector<8xf32>
    %45 = vector.multi_reduction <maximumf>, %44, %cst_15 [1] : vector<8x8xf32> to vector<8xf32>
    %46 = vector.shape_cast %45 : vector<8xf32> to vector<8x1xf32>
    %47 = vector.broadcast %46 : vector<8x1xf32> to vector<8x8xf32>
    %48 = arith.subf %44, %47 : vector<8x8xf32>
    %49 = math.exp %48 : vector<8x8xf32>
    %cst_16 = arith.constant dense<0.000000e+00> : vector<8xf32>
    %50 = vector.multi_reduction <add>, %49, %cst_16 [1] : vector<8x8xf32> to vector<8xf32>
    %51 = vector.shape_cast %50 : vector<8xf32> to vector<8x1xf32>
    %52 = tpu.reciprocal %51 {approx = true} : vector<8x1xf32> -> vector<8x1xf32>
    %53 = vector.broadcast %52 : vector<8x1xf32> to vector<8x8xf32>
    %54 = arith.mulf %49, %53 : vector<8x8xf32>
    %55 = arith.truncf %54 : vector<8x8xf32> to vector<8x8xbf16>
    %cst_17 = arith.constant dense<0.000000e+00> : vector<8x8xf32>
    %56 = tpu.matmul %55, %43, %cst_17 {dimension_numbers = #tpu.dot_dimension_numbers<[1], [0], [0], [1], [0, 0, 1, 1], [], []>} : vector<8x8xbf16>, vector<8x8xbf16>, vector<8x8xf32> -> vector<8x8xf32>
    %57 = vector.extract_strided_slice %8 {offsets = [0, 24], sizes = [8, 8], strides = [1, 1]} : vector<8x96xbf16> to vector<8x8xbf16>
    %58 = vector.extract_strided_slice %8 {offsets = [0, 56], sizes = [8, 8], strides = [1, 1]} : vector<8x96xbf16> to vector<8x8xbf16>
    %59 = vector.extract_strided_slice %8 {offsets = [0, 88], sizes = [8, 8], strides = [1, 1]} : vector<8x96xbf16> to vector<8x8xbf16>
    %cst_18 = arith.constant dense<0.000000e+00> : vector<8x8xf32>
    %60 = tpu.matmul %57, %58, %cst_18 {dimension_numbers = #tpu.dot_dimension_numbers<[1], [1], [0], [0], [0, 0, 1, 0], [], []>} : vector<8x8xbf16>, vector<8x8xbf16>, vector<8x8xf32> -> vector<8x8xf32>
    %cst_19 = arith.constant dense<0xFF800000> : vector<8xf32>
    %61 = vector.multi_reduction <maximumf>, %60, %cst_19 [1] : vector<8x8xf32> to vector<8xf32>
    %62 = vector.shape_cast %61 : vector<8xf32> to vector<8x1xf32>
    %63 = vector.broadcast %62 : vector<8x1xf32> to vector<8x8xf32>
    %64 = arith.subf %60, %63 : vector<8x8xf32>
    %65 = math.exp %64 : vector<8x8xf32>
    %cst_20 = arith.constant dense<0.000000e+00> : vector<8xf32>
    %66 = vector.multi_reduction <add>, %65, %cst_20 [1] : vector<8x8xf32> to vector<8xf32>
    %67 = vector.shape_cast %66 : vector<8xf32> to vector<8x1xf32>
    %68 = tpu.reciprocal %67 {approx = true} : vector<8x1xf32> -> vector<8x1xf32>
    %69 = vector.broadcast %68 : vector<8x1xf32> to vector<8x8xf32>
    %70 = arith.mulf %65, %69 : vector<8x8xf32>
    %71 = arith.truncf %70 : vector<8x8xf32> to vector<8x8xbf16>
    %cst_21 = arith.constant dense<0.000000e+00> : vector<8x8xf32>
    %72 = tpu.matmul %71, %59, %cst_21 {dimension_numbers = #tpu.dot_dimension_numbers<[1], [0], [0], [1], [0, 0, 1, 1], [], []>} : vector<8x8xbf16>, vector<8x8xbf16>, vector<8x8xf32> -> vector<8x8xf32>
    %73 = tpu.concatenate %24, %40, %56, %72 in 1 : vector<8x8xf32>, vector<8x8xf32>, vector<8x8xf32>, vector<8x8xf32> -> vector<8x32xf32>
    %74 = arith.truncf %73 : vector<8x32xf32> to vector<8x32xbf16>
    %c0_22 = arith.constant 0 : index
    %c0_23 = arith.constant 0 : index
    %75 = vector.load %arg4[%c0_22, %c0_23] : memref<32x32xbf16, #tpu.memory_space<vmem>>, vector<32x32xbf16>
    %cst_24 = arith.constant dense<0.000000e+00> : vector<8x32xf32>
    %76 = tpu.matmul %74, %75, %cst_24 {dimension_numbers = #tpu.dot_dimension_numbers<[1], [0], [0], [1], [0, 0, 1, 1], [], []>} : vector<8x32xbf16>, vector<32x32xbf16>, vector<8x32xf32> -> vector<8x32xf32>
    %c0_25 = arith.constant 0 : index
    %c0_26 = arith.constant 0 : index
    %77 = vector.load %arg5[%c0_25, %c0_26] : memref<1x32xf32, #tpu.memory_space<vmem>>, vector<1x32xf32>
    %78 = vector.broadcast %77 : vector<1x32xf32> to vector<8x32xf32>
    %79 = arith.addf %76, %78 : vector<8x32xf32>
    %80 = arith.addf %79, %2 : vector<8x32xf32>
    %c0_27 = arith.constant 0 : index
    %c0_28 = arith.constant 0 : index
    %81 = vector.load %arg6[%c0_27, %c0_28] : memref<1x32xf32, #tpu.memory_space<vmem>>, vector<1x32xf32>
    %c0_29 = arith.constant 0 : index
    %c0_30 = arith.constant 0 : index
    %82 = vector.load %arg7[%c0_29, %c0_30] : memref<1x32xf32, #tpu.memory_space<vmem>>, vector<1x32xf32>
    %cst_31 = arith.constant dense<0.000000e+00> : vector<8xf32>
    %83 = vector.multi_reduction <add>, %80, %cst_31 [1] : vector<8x32xf32> to vector<8xf32>
    %84 = vector.shape_cast %83 : vector<8xf32> to vector<8x1xf32>
    %cst_32 = arith.constant 3.200000e+01 : f32
    %85 = vector.broadcast %cst_32 : f32 to vector<8x1xf32>
    %86 = arith.divf %84, %85 : vector<8x1xf32>
    %87 = vector.broadcast %86 : vector<8x1xf32> to vector<8x32xf32>
    %88 = arith.subf %80, %87 : vector<8x32xf32>
    %89 = arith.mulf %88, %88 : vector<8x32xf32>
    %cst_33 = arith.constant dense<0.000000e+00> : vector<8xf32>
    %90 = vector.multi_reduction <add>, %89, %cst_33 [1] : vector<8x32xf32> to vector<8xf32>
    %91 = vector.shape_cast %90 : vector<8xf32> to vector<8x1xf32>
    %cst_34 = arith.constant 3.200000e+01 : f32
    %92 = vector.broadcast %cst_34 : f32 to vector<8x1xf32>
    %93 = arith.divf %91, %92 : vector<8x1xf32>
    %94 = vector.broadcast %86 : vector<8x1xf32> to vector<8x32xf32>
    %95 = arith.subf %80, %94 : vector<8x32xf32>
    %cst_35 = arith.constant 9.99999996E-13 : f32
    %96 = vector.broadcast %cst_35 : f32 to vector<8x1xf32>
    %97 = arith.addf %93, %96 : vector<8x1xf32>
    %98 = math.rsqrt %97 : vector<8x1xf32>
    %99 = vector.broadcast %98 : vector<8x1xf32> to vector<8x32xf32>
    %100 = arith.mulf %95, %99 : vector<8x32xf32>
    %101 = vector.broadcast %81 : vector<1x32xf32> to vector<8x32xf32>
    %102 = arith.mulf %100, %101 : vector<8x32xf32>
    %103 = vector.broadcast %82 : vector<1x32xf32> to vector<8x32xf32>
    %104 = arith.addf %102, %103 : vector<8x32xf32>
    %105 = arith.truncf %104 : vector<8x32xf32> to vector<8x32xbf16>
    %c0_36 = arith.constant 0 : index
    %c0_37 = arith.constant 0 : index
    %c0_38 = arith.constant 0 : index
    %106 = vector.load %arg8[%c0_36, %c0_37, %c0_38] : memref<1x8x32xbf16, #tpu.memory_space<vmem>>, vector<1x8x32xbf16>
    %107 = vector.shape_cast %106 : vector<1x8x32xbf16> to vector<8x32xbf16>
    %108 = vector.shape_cast %105 : vector<8x32xbf16> to vector<1x8x32xbf16>
    tpu.vector_store %arg8[%c0_36, %c0_37, %c0_38], %108 {strides = array<i32>} : memref<1x8x32xbf16, #tpu.memory_space<vmem>>, vector<1x8x32xbf16>,
    return
  }
  func.func @transform_0(%arg0: i32) -> (i32, i32, i32) {
    %c0_i32 = arith.constant 0 : i32
    %c0_i32_0 = arith.constant 0 : i32
    %c0_i32_1 = arith.constant 0 : i32
    return %arg0, %c0_i32, %c0_i32_0 : i32, i32, i32
  }
  func.func @transform_1(%arg0: i32) -> (i32, i32) {
    %c0_i32 = arith.constant 0 : i32
    %c0_i32_0 = arith.constant 0 : i32
    %c0_i32_1 = arith.constant 0 : i32
    return %c0_i32, %c0_i32_0 : i32, i32
  }
  func.func @transform_2(%arg0: i32) -> (i32, i32) {
    %c0_i32 = arith.constant 0 : i32
    %c0_i32_0 = arith.constant 0 : i32
    %c0_i32_1 = arith.constant 0 : i32
    return %c0_i32, %c0_i32_0 : i32, i32
  }
  func.func @transform_3(%arg0: i32) -> (i32, i32) {
    %c0_i32 = arith.constant 0 : i32
    %c0_i32_0 = arith.constant 0 : i32
    %c0_i32_1 = arith.constant 0 : i32
    return %c0_i32, %c0_i32_0 : i32, i32
  }
  func.func @transform_4(%arg0: i32) -> (i32, i32) {
    %c0_i32 = arith.constant 0 : i32
    %c0_i32_0 = arith.constant 0 : i32
    %c0_i32_1 = arith.constant 0 : i32
    return %c0_i32, %c0_i32_0 : i32, i32
  }
  func.func @transform_5(%arg0: i32) -> (i32, i32) {
    %c0_i32 = arith.constant 0 : i32
    %c0_i32_0 = arith.constant 0 : i32
    %c0_i32_1 = arith.constant 0 : i32
    return %c0_i32, %c0_i32_0 : i32, i32
  }
  func.func @transform_6(%arg0: i32) -> (i32, i32) {
    %c0_i32 = arith.constant 0 : i32
    %c0_i32_0 = arith.constant 0 : i32
    %c0_i32_1 = arith.constant 0 : i32
    return %c0_i32, %c0_i32_0 : i32, i32
  }
  func.func @transform_7(%arg0: i32) -> (i32, i32, i32) {
    %c0_i32 = arith.constant 0 : i32
    %c0_i32_0 = arith.constant 0 : i32
    %c0_i32_1 = arith.constant 0 : i32
    return %arg0, %c0_i32, %c0_i32_0 : i32, i32, i32
  }
}

module attributes {stable_mosaic.version = 11 : i64} {
  func.func @_ffn_block_kernel(%arg0: i32, %arg1: memref<1x8x32xbf16, #tpu.memory_space<vmem>>, %arg2: memref<32x64xbf16, #tpu.memory_space<vmem>>, %arg3: memref<1x64xf32, #tpu.memory_space<vmem>>, %arg4: memref<64x32xbf16, #tpu.memory_space<vmem>>, %arg5: memref<1x32xf32, #tpu.memory_space<vmem>>, %arg6: memref<1x32xf32, #tpu.memory_space<vmem>>, %arg7: memref<1x32xf32, #tpu.memory_space<vmem>>, %arg8: memref<1x8x32xbf16, #tpu.memory_space<vmem>>) attributes {dimension_semantics = [#tpu.dimension_semantics<parallel>], iteration_bounds = array<i64: 2>, scalar_prefetch = 0 : i64, scratch_operands = 0 : i64, tpu.core_type = #tpu.core_type<tc>, window_params = [{transform_indices = @transform_0, window_bounds = array<i64: 1, 8, 32>}, {pipeline_mode = #tpu.pipeline_mode<synchronous>, transform_indices = @transform_1, window_bounds = array<i64: 32, 64>}, {pipeline_mode = #tpu.pipeline_mode<synchronous>, transform_indices = @transform_2, window_bounds = array<i64: 1, 64>}, {pipeline_mode = #tpu.pipeline_mode<synchronous>, transform_indices = @transform_3, window_bounds = array<i64: 64, 32>}, {pipeline_mode = #tpu.pipeline_mode<synchronous>, transform_indices = @transform_4, window_bounds = array<i64: 1, 32>}, {pipeline_mode = #tpu.pipeline_mode<synchronous>, transform_indices = @transform_5, window_bounds = array<i64: 1, 32>}, {pipeline_mode = #tpu.pipeline_mode<synchronous>, transform_indices = @transform_6, window_bounds = array<i64: 1, 32>}, {transform_indices = @transform_7, window_bounds = array<i64: 1, 8, 32>}]} {
    %c0 = arith.constant 0 : index
    %c0_0 = arith.constant 0 : index
    %c0_1 = arith.constant 0 : index
    %0 = vector.load %arg1[%c0, %c0_0, %c0_1] : memref<1x8x32xbf16, #tpu.memory_space<vmem>>, vector<1x8x32xbf16>
    %1 = vector.shape_cast %0 : vector<1x8x32xbf16> to vector<8x32xbf16>
    %c0_2 = arith.constant 0 : index
    %c0_3 = arith.constant 0 : index
    %2 = vector.load %arg2[%c0_2, %c0_3] : memref<32x64xbf16, #tpu.memory_space<vmem>>, vector<32x64xbf16>
    %cst = arith.constant dense<0.000000e+00> : vector<8x64xf32>
    %3 = tpu.matmul %1, %2, %cst {dimension_numbers = #tpu.dot_dimension_numbers<[1], [0], [0], [1], [0, 0, 1, 1], [], []>} : vector<8x32xbf16>, vector<32x64xbf16>, vector<8x64xf32> -> vector<8x64xf32>
    %c0_4 = arith.constant 0 : index
    %c0_5 = arith.constant 0 : index
    %4 = vector.load %arg3[%c0_4, %c0_5] : memref<1x64xf32, #tpu.memory_space<vmem>>, vector<1x64xf32>
    %5 = vector.broadcast %4 : vector<1x64xf32> to vector<8x64xf32>
    %6 = arith.addf %3, %5 : vector<8x64xf32>
    %7 = arith.mulf %6, %6 : vector<8x64xf32>
    %8 = arith.mulf %6, %7 : vector<8x64xf32>
    %cst_6 = arith.constant 4.471500e-02 : f32
    %9 = vector.broadcast %cst_6 : f32 to vector<8x64xf32>
    %10 = arith.mulf %9, %8 : vector<8x64xf32>
    %11 = arith.addf %6, %10 : vector<8x64xf32>
    %cst_7 = arith.constant 0.797884583 : f32
    %12 = vector.broadcast %cst_7 : f32 to vector<8x64xf32>
    %13 = arith.mulf %12, %11 : vector<8x64xf32>
    %14 = math.tanh %13 : vector<8x64xf32>
    %cst_8 = arith.constant 1.000000e+00 : f32
    %15 = vector.broadcast %cst_8 : f32 to vector<8x64xf32>
    %16 = arith.addf %15, %14 : vector<8x64xf32>
    %cst_9 = arith.constant 5.000000e-01 : f32
    %17 = vector.broadcast %cst_9 : f32 to vector<8x64xf32>
    %18 = arith.mulf %17, %16 : vector<8x64xf32>
    %19 = arith.mulf %6, %18 : vector<8x64xf32>
    %20 = arith.truncf %19 : vector<8x64xf32> to vector<8x64xbf16>
    %c0_10 = arith.constant 0 : index
    %c0_11 = arith.constant 0 : index
    %21 = vector.load %arg4[%c0_10, %c0_11] : memref<64x32xbf16, #tpu.memory_space<vmem>>, vector<64x32xbf16>
    %cst_12 = arith.constant dense<0.000000e+00> : vector<8x32xf32>
    %22 = tpu.matmul %20, %21, %cst_12 {dimension_numbers = #tpu.dot_dimension_numbers<[1], [0], [0], [1], [0, 0, 1, 1], [], []>} : vector<8x64xbf16>, vector<64x32xbf16>, vector<8x32xf32> -> vector<8x32xf32>
    %c0_13 = arith.constant 0 : index
    %c0_14 = arith.constant 0 : index
    %23 = vector.load %arg5[%c0_13, %c0_14] : memref<1x32xf32, #tpu.memory_space<vmem>>, vector<1x32xf32>
    %24 = vector.broadcast %23 : vector<1x32xf32> to vector<8x32xf32>
    %25 = arith.addf %22, %24 : vector<8x32xf32>
    %26 = arith.extf %1 : vector<8x32xbf16> to vector<8x32xf32>
    %27 = arith.addf %25, %26 : vector<8x32xf32>
    %c0_15 = arith.constant 0 : index
    %c0_16 = arith.constant 0 : index
    %28 = vector.load %arg6[%c0_15, %c0_16] : memref<1x32xf32, #tpu.memory_space<vmem>>, vector<1x32xf32>
    %c0_17 = arith.constant 0 : index
    %c0_18 = arith.constant 0 : index
    %29 = vector.load %arg7[%c0_17, %c0_18] : memref<1x32xf32, #tpu.memory_space<vmem>>, vector<1x32xf32>
    %cst_19 = arith.constant dense<0.000000e+00> : vector<8xf32>
    %30 = vector.multi_reduction <add>, %27, %cst_19 [1] : vector<8x32xf32> to vector<8xf32>
    %31 = vector.shape_cast %30 : vector<8xf32> to vector<8x1xf32>
    %cst_20 = arith.constant 3.200000e+01 : f32
    %32 = vector.broadcast %cst_20 : f32 to vector<8x1xf32>
    %33 = arith.divf %31, %32 : vector<8x1xf32>
    %34 = vector.broadcast %33 : vector<8x1xf32> to vector<8x32xf32>
    %35 = arith.subf %27, %34 : vector<8x32xf32>
    %36 = arith.mulf %35, %35 : vector<8x32xf32>
    %cst_21 = arith.constant dense<0.000000e+00> : vector<8xf32>
    %37 = vector.multi_reduction <add>, %36, %cst_21 [1] : vector<8x32xf32> to vector<8xf32>
    %38 = vector.shape_cast %37 : vector<8xf32> to vector<8x1xf32>
    %cst_22 = arith.constant 3.200000e+01 : f32
    %39 = vector.broadcast %cst_22 : f32 to vector<8x1xf32>
    %40 = arith.divf %38, %39 : vector<8x1xf32>
    %41 = vector.broadcast %33 : vector<8x1xf32> to vector<8x32xf32>
    %42 = arith.subf %27, %41 : vector<8x32xf32>
    %cst_23 = arith.constant 9.99999996E-13 : f32
    %43 = vector.broadcast %cst_23 : f32 to vector<8x1xf32>
    %44 = arith.addf %40, %43 : vector<8x1xf32>
    %45 = math.rsqrt %44 : vector<8x1xf32>
    %46 = vector.broadcast %45 : vector<8x1xf32> to vector<8x32xf32>
    %47 = arith.mulf %42, %46 : vector<8x32xf32>
    %48 = vector.broadcast %28 : vector<1x32xf32> to vector<8x32xf32>
    %49 = arith.mulf %47, %48 : vector<8x32xf32>
    %50 = vector.broadcast %29 : vector<1x32xf32> to vector<8x32xf32>
    %51 = arith.addf %49, %50 : vector<8x32xf32>
    %52 = arith.truncf %51 : vector<8x32xf32> to vector<8x32xbf16>
    %c0_24 = arith.constant 0 : index
    %c0_25 = arith.constant 0 : index
    %c0_26 = arith.constant 0 : index
    %53 = vector.load %arg8[%c0_24, %c0_25, %c0_26] : memref<1x8x32xbf16, #tpu.memory_space<vmem>>, vector<1x8x32xbf16>
    %54 = vector.shape_cast %53 : vector<1x8x32xbf16> to vector<8x32xbf16>
    %55 = vector.shape_cast %52 : vector<8x32xbf16> to vector<1x8x32xbf16>
    tpu.vector_store %arg8[%c0_24, %c0_25, %c0_26], %55 {strides = array<i32>} : memref<1x8x32xbf16, #tpu.memory_space<vmem>>, vector<1x8x32xbf16>,
    return
  }
  func.func @transform_0(%arg0: i32) -> (i32, i32, i32) {
    %c0_i32 = arith.constant 0 : i32
    %c0_i32_0 = arith.constant 0 : i32
    %c0_i32_1 = arith.constant 0 : i32
    return %arg0, %c0_i32, %c0_i32_0 : i32, i32, i32
  }
  func.func @transform_1(%arg0: i32) -> (i32, i32) {
    %c0_i32 = arith.constant 0 : i32
    %c0_i32_0 = arith.constant 0 : i32
    %c0_i32_1 = arith.constant 0 : i32
    return %c0_i32, %c0_i32_0 : i32, i32
  }
  func.func @transform_2(%arg0: i32) -> (i32, i32) {
    %c0_i32 = arith.constant 0 : i32
    %c0_i32_0 = arith.constant 0 : i32
    %c0_i32_1 = arith.constant 0 : i32
    return %c0_i32, %c0_i32_0 : i32, i32
  }
  func.func @transform_3(%arg0: i32) -> (i32, i32) {
    %c0_i32 = arith.constant 0 : i32
    %c0_i32_0 = arith.constant 0 : i32
    %c0_i32_1 = arith.constant 0 : i32
    return %c0_i32, %c0_i32_0 : i32, i32
  }
  func.func @transform_4(%arg0: i32) -> (i32, i32) {
    %c0_i32 = arith.constant 0 : i32
    %c0_i32_0 = arith.constant 0 : i32
    %c0_i32_1 = arith.constant 0 : i32
    return %c0_i32, %c0_i32_0 : i32, i32
  }
  func.func @transform_5(%arg0: i32) -> (i32, i32) {
    %c0_i32 = arith.constant 0 : i32
    %c0_i32_0 = arith.constant 0 : i32
    %c0_i32_1 = arith.constant 0 : i32
    return %c0_i32, %c0_i32_0 : i32, i32
  }
  func.func @transform_6(%arg0: i32) -> (i32, i32) {
    %c0_i32 = arith.constant 0 : i32
    %c0_i32_0 = arith.constant 0 : i32
    %c0_i32_1 = arith.constant 0 : i32
    return %c0_i32, %c0_i32_0 : i32, i32
  }
  func.func @transform_7(%arg0: i32) -> (i32, i32, i32) {
    %c0_i32 = arith.constant 0 : i32
    %c0_i32_0 = arith.constant 0 : i32
    %c0_i32_1 = arith.constant 0 : i32
    return %arg0, %c0_i32, %c0_i32_0 : i32, i32, i32
  }
}

module attributes {stable_mosaic.version = 11 : i64} {
  func.func @_embed_ln_kernel(%arg0: i32, %arg1: memref<1x8x32xbf16, #tpu.memory_space<vmem>>, %arg2: memref<8x32xf32, #tpu.memory_space<vmem>>, %arg3: memref<1x32xf32, #tpu.memory_space<vmem>>, %arg4: memref<1x32xf32, #tpu.memory_space<vmem>>, %arg5: memref<1x8x32xbf16, #tpu.memory_space<vmem>>) attributes {dimension_semantics = [#tpu.dimension_semantics<parallel>], iteration_bounds = array<i64: 2>, scalar_prefetch = 0 : i64, scratch_operands = 0 : i64, tpu.core_type = #tpu.core_type<tc>, window_params = [{transform_indices = @transform_0, window_bounds = array<i64: 1, 8, 32>}, {pipeline_mode = #tpu.pipeline_mode<synchronous>, transform_indices = @transform_1, window_bounds = array<i64: 8, 32>}, {pipeline_mode = #tpu.pipeline_mode<synchronous>, transform_indices = @transform_2, window_bounds = array<i64: 1, 32>}, {pipeline_mode = #tpu.pipeline_mode<synchronous>, transform_indices = @transform_3, window_bounds = array<i64: 1, 32>}, {transform_indices = @transform_4, window_bounds = array<i64: 1, 8, 32>}]} {
    %c0 = arith.constant 0 : index
    %c0_0 = arith.constant 0 : index
    %c0_1 = arith.constant 0 : index
    %0 = vector.load %arg1[%c0, %c0_0, %c0_1] : memref<1x8x32xbf16, #tpu.memory_space<vmem>>, vector<1x8x32xbf16>
    %1 = vector.shape_cast %0 : vector<1x8x32xbf16> to vector<8x32xbf16>
    %2 = arith.extf %1 : vector<8x32xbf16> to vector<8x32xf32>
    %c0_2 = arith.constant 0 : index
    %c0_3 = arith.constant 0 : index
    %3 = vector.load %arg2[%c0_2, %c0_3] : memref<8x32xf32, #tpu.memory_space<vmem>>, vector<8x32xf32>
    %4 = arith.addf %2, %3 : vector<8x32xf32>
    %c0_4 = arith.constant 0 : index
    %c0_5 = arith.constant 0 : index
    %5 = vector.load %arg3[%c0_4, %c0_5] : memref<1x32xf32, #tpu.memory_space<vmem>>, vector<1x32xf32>
    %c0_6 = arith.constant 0 : index
    %c0_7 = arith.constant 0 : index
    %6 = vector.load %arg4[%c0_6, %c0_7] : memref<1x32xf32, #tpu.memory_space<vmem>>, vector<1x32xf32>
    %cst = arith.constant dense<0.000000e+00> : vector<8xf32>
    %7 = vector.multi_reduction <add>, %4, %cst [1] : vector<8x32xf32> to vector<8xf32>
    %8 = vector.shape_cast %7 : vector<8xf32> to vector<8x1xf32>
    %cst_8 = arith.constant 3.200000e+01 : f32
    %9 = vector.broadcast %cst_8 : f32 to vector<8x1xf32>
    %10 = arith.divf %8, %9 : vector<8x1xf32>
    %11 = vector.broadcast %10 : vector<8x1xf32> to vector<8x32xf32>
    %12 = arith.subf %4, %11 : vector<8x32xf32>
    %13 = arith.mulf %12, %12 : vector<8x32xf32>
    %cst_9 = arith.constant dense<0.000000e+00> : vector<8xf32>
    %14 = vector.multi_reduction <add>, %13, %cst_9 [1] : vector<8x32xf32> to vector<8xf32>
    %15 = vector.shape_cast %14 : vector<8xf32> to vector<8x1xf32>
    %cst_10 = arith.constant 3.200000e+01 : f32
    %16 = vector.broadcast %cst_10 : f32 to vector<8x1xf32>
    %17 = arith.divf %15, %16 : vector<8x1xf32>
    %18 = vector.broadcast %10 : vector<8x1xf32> to vector<8x32xf32>
    %19 = arith.subf %4, %18 : vector<8x32xf32>
    %cst_11 = arith.constant 9.99999996E-13 : f32
    %20 = vector.broadcast %cst_11 : f32 to vector<8x1xf32>
    %21 = arith.addf %17, %20 : vector<8x1xf32>
    %22 = math.rsqrt %21 : vector<8x1xf32>
    %23 = vector.broadcast %22 : vector<8x1xf32> to vector<8x32xf32>
    %24 = arith.mulf %19, %23 : vector<8x32xf32>
    %25 = vector.broadcast %5 : vector<1x32xf32> to vector<8x32xf32>
    %26 = arith.mulf %24, %25 : vector<8x32xf32>
    %27 = vector.broadcast %6 : vector<1x32xf32> to vector<8x32xf32>
    %28 = arith.addf %26, %27 : vector<8x32xf32>
    %29 = arith.truncf %28 : vector<8x32xf32> to vector<8x32xbf16>
    %c0_12 = arith.constant 0 : index
    %c0_13 = arith.constant 0 : index
    %c0_14 = arith.constant 0 : index
    %30 = vector.load %arg5[%c0_12, %c0_13, %c0_14] : memref<1x8x32xbf16, #tpu.memory_space<vmem>>, vector<1x8x32xbf16>
    %31 = vector.shape_cast %30 : vector<1x8x32xbf16> to vector<8x32xbf16>
    %32 = vector.shape_cast %29 : vector<8x32xbf16> to vector<1x8x32xbf16>
    tpu.vector_store %arg5[%c0_12, %c0_13, %c0_14], %32 {strides = array<i32>} : memref<1x8x32xbf16, #tpu.memory_space<vmem>>, vector<1x8x32xbf16>,
    return
  }
  func.func @transform_0(%arg0: i32) -> (i32, i32, i32) {
    %c0_i32 = arith.constant 0 : i32
    %c0_i32_0 = arith.constant 0 : i32
    %c0_i32_1 = arith.constant 0 : i32
    return %arg0, %c0_i32, %c0_i32_0 : i32, i32, i32
  }
  func.func @transform_1(%arg0: i32) -> (i32, i32) {
    %c0_i32 = arith.constant 0 : i32
    %c0_i32_0 = arith.constant 0 : i32
    %c0_i32_1 = arith.constant 0 : i32
    return %c0_i32, %c0_i32_0 : i32, i32
  }
  func.func @transform_2(%arg0: i32) -> (i32, i32) {
    %c0_i32 = arith.constant 0 : i32
    %c0_i32_0 = arith.constant 0 : i32
    %c0_i32_1 = arith.constant 0 : i32
    return %c0_i32, %c0_i32_0 : i32, i32
  }
  func.func @transform_3(%arg0: i32) -> (i32, i32) {
    %c0_i32 = arith.constant 0 : i32
    %c0_i32_0 = arith.constant 0 : i32
    %c0_i32_1 = arith.constant 0 : i32
    return %c0_i32, %c0_i32_0 : i32, i32
  }
  func.func @transform_4(%arg0: i32) -> (i32, i32, i32) {
    %c0_i32 = arith.constant 0 : i32
    %c0_i32_0 = arith.constant 0 : i32
    %c0_i32_1 = arith.constant 0 : i32
    return %arg0, %c0_i32, %c0_i32_0 : i32, i32, i32
  }
}

module attributes {stable_mosaic.version = 11 : i64} {
  func.func @_head_kernel(%arg0: i32, %arg1: memref<2x32xbf16, #tpu.memory_space<vmem>>, %arg2: memref<32x32xbf16, #tpu.memory_space<vmem>>, %arg3: memref<1x32xf32, #tpu.memory_space<vmem>>, %arg4: memref<32x8xbf16, #tpu.memory_space<vmem>>, %arg5: memref<1x8xf32, #tpu.memory_space<vmem>>, %arg6: memref<2x8xf32, #tpu.memory_space<vmem>>) attributes {dimension_semantics = [#tpu.dimension_semantics<arbitrary>], iteration_bounds = array<i64: 1>, scalar_prefetch = 0 : i64, scratch_operands = 0 : i64, tpu.core_type = #tpu.core_type<tc>, window_params = [{pipeline_mode = #tpu.pipeline_mode<synchronous>, transform_indices = @transform_0, window_bounds = array<i64: 2, 32>}, {pipeline_mode = #tpu.pipeline_mode<synchronous>, transform_indices = @transform_1, window_bounds = array<i64: 32, 32>}, {pipeline_mode = #tpu.pipeline_mode<synchronous>, transform_indices = @transform_2, window_bounds = array<i64: 1, 32>}, {pipeline_mode = #tpu.pipeline_mode<synchronous>, transform_indices = @transform_3, window_bounds = array<i64: 32, 8>}, {pipeline_mode = #tpu.pipeline_mode<synchronous>, transform_indices = @transform_4, window_bounds = array<i64: 1, 8>}, {pipeline_mode = #tpu.pipeline_mode<synchronous>, transform_indices = @transform_5, window_bounds = array<i64: 2, 8>}]} {
    %c0 = arith.constant 0 : index
    %c0_0 = arith.constant 0 : index
    %0 = vector.load %arg1[%c0, %c0_0] : memref<2x32xbf16, #tpu.memory_space<vmem>>, vector<2x32xbf16>
    %c0_1 = arith.constant 0 : index
    %c0_2 = arith.constant 0 : index
    %1 = vector.load %arg2[%c0_1, %c0_2] : memref<32x32xbf16, #tpu.memory_space<vmem>>, vector<32x32xbf16>
    %cst = arith.constant dense<0.000000e+00> : vector<2x32xf32>
    %2 = tpu.matmul %0, %1, %cst {dimension_numbers = #tpu.dot_dimension_numbers<[1], [0], [0], [1], [0, 0, 1, 1], [], []>} : vector<2x32xbf16>, vector<32x32xbf16>, vector<2x32xf32> -> vector<2x32xf32>
    %c0_3 = arith.constant 0 : index
    %c0_4 = arith.constant 0 : index
    %3 = vector.load %arg3[%c0_3, %c0_4] : memref<1x32xf32, #tpu.memory_space<vmem>>, vector<1x32xf32>
    %4 = vector.broadcast %3 : vector<1x32xf32> to vector<2x32xf32>
    %5 = arith.addf %2, %4 : vector<2x32xf32>
    %6 = math.tanh %5 : vector<2x32xf32>
    %7 = arith.truncf %6 : vector<2x32xf32> to vector<2x32xbf16>
    %c0_5 = arith.constant 0 : index
    %c0_6 = arith.constant 0 : index
    %8 = vector.load %arg4[%c0_5, %c0_6] : memref<32x8xbf16, #tpu.memory_space<vmem>>, vector<32x8xbf16>
    %cst_7 = arith.constant dense<0.000000e+00> : vector<2x8xf32>
    %9 = tpu.matmul %7, %8, %cst_7 {dimension_numbers = #tpu.dot_dimension_numbers<[1], [0], [0], [1], [0, 0, 1, 1], [], []>} : vector<2x32xbf16>, vector<32x8xbf16>, vector<2x8xf32> -> vector<2x8xf32>
    %c0_8 = arith.constant 0 : index
    %c0_9 = arith.constant 0 : index
    %10 = vector.load %arg5[%c0_8, %c0_9] : memref<1x8xf32, #tpu.memory_space<vmem>>, vector<1x8xf32>
    %11 = vector.broadcast %10 : vector<1x8xf32> to vector<2x8xf32>
    %12 = arith.addf %9, %11 : vector<2x8xf32>
    %13 = math.absf %12 : vector<2x8xf32>
    %cst_10 = arith.constant 0.000000e+00 : f32
    %14 = vector.broadcast %cst_10 : f32 to vector<2x8xf32>
    %15 = arith.subf %14, %13 : vector<2x8xf32>
    %16 = math.exp %15 : vector<2x8xf32>
    %cst_11 = arith.constant 0.000000e+00 : f32
    %17 = vector.broadcast %cst_11 : f32 to vector<2x8xf32>
    %18 = arith.cmpf oge, %12, %17 : vector<2x8xf32>
    %cst_12 = arith.constant 1.000000e+00 : f32
    %19 = vector.broadcast %cst_12 : f32 to vector<2x8xf32>
    %20 = arith.addf %19, %16 : vector<2x8xf32>
    %cst_13 = arith.constant 1.000000e+00 : f32
    %21 = vector.broadcast %cst_13 : f32 to vector<2x8xf32>
    %22 = arith.divf %21, %20 : vector<2x8xf32>
    %cst_14 = arith.constant 1.000000e+00 : f32
    %23 = vector.broadcast %cst_14 : f32 to vector<2x8xf32>
    %24 = arith.addf %23, %16 : vector<2x8xf32>
    %25 = arith.divf %16, %24 : vector<2x8xf32>
    %26 = arith.select %18, %22, %25 : vector<2x8xi1>, vector<2x8xf32>
    %c0_15 = arith.constant 0 : index
    %c0_16 = arith.constant 0 : index
    %27 = vector.load %arg6[%c0_15, %c0_16] : memref<2x8xf32, #tpu.memory_space<vmem>>, vector<2x8xf32>
    tpu.vector_store %arg6[%c0_15, %c0_16], %26 {strides = array<i32>} : memref<2x8xf32, #tpu.memory_space<vmem>>, vector<2x8xf32>,
    return
  }
  func.func @transform_0(%arg0: i32) -> (i32, i32) {
    %c0_i32 = arith.constant 0 : i32
    %c0_i32_0 = arith.constant 0 : i32
    %c0_i32_1 = arith.constant 0 : i32
    return %c0_i32, %c0_i32_0 : i32, i32
  }
  func.func @transform_1(%arg0: i32) -> (i32, i32) {
    %c0_i32 = arith.constant 0 : i32
    %c0_i32_0 = arith.constant 0 : i32
    %c0_i32_1 = arith.constant 0 : i32
    return %c0_i32, %c0_i32_0 : i32, i32
  }
  func.func @transform_2(%arg0: i32) -> (i32, i32) {
    %c0_i32 = arith.constant 0 : i32
    %c0_i32_0 = arith.constant 0 : i32
    %c0_i32_1 = arith.constant 0 : i32
    return %c0_i32, %c0_i32_0 : i32, i32
  }
  func.func @transform_3(%arg0: i32) -> (i32, i32) {
    %c0_i32 = arith.constant 0 : i32
    %c0_i32_0 = arith.constant 0 : i32
    %c0_i32_1 = arith.constant 0 : i32
    return %c0_i32, %c0_i32_0 : i32, i32
  }
  func.func @transform_4(%arg0: i32) -> (i32, i32) {
    %c0_i32 = arith.constant 0 : i32
    %c0_i32_0 = arith.constant 0 : i32
    %c0_i32_1 = arith.constant 0 : i32
    return %c0_i32, %c0_i32_0 : i32, i32
  }
  func.func @transform_5(%arg0: i32) -> (i32, i32) {
    %c0_i32 = arith.constant 0 : i32
    %c0_i32_0 = arith.constant 0 : i32
    %c0_i32_1 = arith.constant 0 : i32
    return %c0_i32, %c0_i32_0 : i32, i32
  }
}

</mosaic_0001>

<bundles_post_ra>
// kernel: mlabel_forward.11
= control target key start
LH: loop header
LB: loop body
LE: loop exit
PB: predicated region body
PF: predicated region fallthrough
CT: control target
= control target key end

     0   :  { %s251_s0 = inlined_call_operand.vmem [shape: bf16[2,32], index: 0, kind: input, shape index: {}]   ;;  %s252_s1 = inlined_call_operand.vmem [shape: bf16[32,32], index: 1, kind: input, shape index: {}]   ;;  %s253_s2 = inlined_call_operand.vmem [shape: f32[1,32], index: 2, kind: input, shape index: {}]   ;;  %s254_s3 = inlined_call_operand.vmem [shape: bf16[32,8], index: 3, kind: input, shape index: {}]   ;;  %s255_s4 = inlined_call_operand.vmem [shape: f32[1,8], index: 4, kind: input, shape index: {}]   ;;  %s256_s5 = inlined_call_operand.hbm [shape: f32[2,8], index: 5, kind: output, shape index: {}]  }
   0x1   :  { %v158_v0 = vld [vmem:[%s252_s1 + $0x8] sm:$0xff]  ;;  %v157_v1 = vld [vmem:[%s252_s1] sm:$0xff] }
   0x2   :  { %53 = vmatpush.bf16.msra.mxu0 %v158_v0 }
   0x3   :  { %10 = vsyncpa [#allocation3], 0  ;;  %v22_v2 = vld [vmem:[%s251_s0] sm:$0x1]  ;;  %vm43_vm0 = vcmask 261120   ;;  %v160_v3 = vld [vmem:[%s254_s3 + $0x8] sm:$0xff] }
   0x4   :  { %91 = vmatpush.bf16.msra.mxu1 %v160_v3  ;;  %v159_v4 = vld [vmem:[%s254_s3] sm:$0xff]  ;;  %s130_s6 = sshll.u32 %s256_s5, 4  ;;  %vm121_vm5 = vcmask 58368   ;;  %s131_s6 = int_to_ptr.hbm [resolvable:$true] %s130_s6 }
   0x5   :  { %v162_v5 = vld [vmem:[%s253_s2] ss:$0 sm:$0xff]  ;;  %s196_s2 = smov [#allocation2]  }
   0x6   :  { %54 = vmatpush.bf16.msra.mxu0 %v157_v1  ;;  %v163_v11 = vld [vmem:[%s255_s4] ss:$0 sm:$0xff]  ;;  %s128_s3 = sshll.u32 %s196_s2, 4  ;;  %s129_s3 = int_to_ptr.vmem [resolvable:$true] %s128_s3 }
   0x8   :  { %92 = vmatpush.bf16.msra.mxu1 %v159_v4 }
   0x9   :  { %147 = vmatmul.msk.bf16.vlgmr.msra.gmra.mxu0 %vm43_vm0, %v22_v2 }
  0x86   :  { %v56_v6 = vpop.f32.mrf.mxu0 }
  0x87   :  { %v57_v7 = vadd.f32 %v162_v5, %v56_v6 }
  0x89   :  { %164 = vtanh.f32 %v57_v7 }
  0x8e   :  { %v58_v8 = vpop.f32.mrf.mxu0 }
  0x8f   :  { %v165_v9 = vpop.eup %164 }
  0x90   :  { %v61_v10 = vpack.c.bf16 %v165_v9, %v165_v9 }
  0x92   :  { %156 = vmatmul.msk.bf16.vlgmr.msra.gmra.mxu1 %vm43_vm0, %v61_v10 }
 0x10f   :  { %v94_v12 = vpop.f32.mrf.mxu1 }
 0x110   :  { %v95_v13 = vadd.f32 %v163_v11, %v94_v12 }
 0x112   :  { %v98_v14 = vand.u32 2147483647, %v95_v13  ;;  %vm102_vm6 = vcmp.ge.f32.partialorder %v95_v13, 0.0 }
 0x114   :  { %v99_v15 = vsub.f32 0.0, %v98_v14 }
 0x116   :  { %v100_v16 = vmul.f32 1.442695, %v99_v15 }
 0x117   :  { %v96_v17 = vpop.f32.mrf.mxu1 }
 0x118   :  { %166 = vpow2.f32 %v100_v16 }
 0x11e   :  { %v167_v18 = vpop.eup %166 }
 0x11f   :  { %v103_v19 = vadd.f32 1.0, %v167_v18 }
 0x121   :  { %168 = vrcp.f32 %v103_v19  ;;  %v115_v23 = vand.u32 2147483648, %v103_v19  ;;  %v113_v25 = vand.u32 2147483647, %v103_v19  ;;  %vm109_vm2 = vweird.f32 %v103_v19 }
 0x123   :  { %v116_v27 = vor.u32 1.1754944e-38, %v115_v23  ;;  %vm114_vm4 = vcmp.eq.f32.partialorder %v113_v25, 8.507059e+37 }
 0x127   :  { %v169_v20 = vpop.eup %168 }
 0x128   :  { %v105_v21 = vmul.f32 %v169_v20, %v103_v19  ;;  %vm110_vm1 = vweird.f32 %v169_v20 }
 0x129   :  { %vm111_vm3 = vmor %vm109_vm2, %vm110_vm1 }
 0x12a   :  { %v106_v22 = vsub.f32 1.0, %v105_v21 }
 0x12c   :  { %v107_v24 = vmul.f32 %v169_v20, %v106_v22 }
 0x12e   :  { %v108_v26 = vadd.f32 %v169_v20, %v107_v24 }
 0x130   :  { %v112_v28 = vsel %vm111_vm3, %v169_v20, %v108_v26 }
 0x131   :  { %v117_v29 = vsel %vm114_vm4, %v116_v27, %v112_v28 }
 0x132   :  { %v119_v30 = vmul.f32 %v167_v18, %v117_v29 }
 0x134   :  { %v120_v31 = vsel %vm102_vm6, %v117_v29, %v119_v30 }
 0x135   :  { %122 = vst.msk [vmem:[#allocation2] sm:$0x3] %vm121_vm5, %v120_v31 }
 0x136   :  { %133 = dma.vmem_to_hbm [thread:$0]  %s129_s3, 32, %s131_s6, [#allocation3]  }
 0x137   :  { %194 = dma.done.wait [#allocation3], 32  }
 0x138   :  { %195 = vsyncadd [#allocation3], 4294967264 }
 0x139   :  { %138 = vsyncpa [#allocation3], 1 }

// kernel: mlabel_forward.6
= control target key start
LH: loop header
LB: loop body
LE: loop exit
PB: predicated region body
PF: predicated region fallthrough
CT: control target
= control target key end

     0   :  { %s351_s15 = smov 0   ;;  %s386_s0 = inlined_call_operand.vmem [shape: bf16[2,8,32], index: 0, kind: input, shape index: {}]   ;;  %s387_s1 = inlined_call_operand.vmem [shape: f32[8,32], index: 1, kind: input, shape index: {}]   ;;  %s388_s2 = inlined_call_operand.vmem [shape: f32[1,32], index: 2, kind: input, shape index: {}]   ;;  %s389_s3 = inlined_call_operand.vmem [shape: f32[1,32], index: 3, kind: input, shape index: {}]   ;;  %s390_s4 = inlined_call_operand.vmem [shape: bf16[2,8,32], index: 4, kind: output, shape index: {}]  }
   0x1 LB: > { %s293_s16 = sadd.s32 4294967295, %s323_s15   ;;  %p297_p0 = scmp.ge.s32.totalorder %s323_s15, 1  ;;  %s323_s15 = sphi %s351_s15, %s14_s15  }
   0x2   : > { %p161_p1 = scmp.lt.s32.totalorder %s323_s15, 3 }
   0x4   : > { %p162_p2 = pnand %p297_p0, %p161_p1 }
   0x5   : > { %p185_p3 = scmp.lt.s32.totalorder (!%p162_p2), %s293_s16, 1 }
   0x6   : > { %165 = sbr.rel (%p162_p2) target bundleno = 290 (0x122), region = 36 }
   0xb   : > { %s392_s16 = smov (!%p185_p3, %s293_s16), 1  ;;  %v195_v1 = vld [vmem:[%s387_s1] sm:$0xff]  ;;  %vm199_vm0 = vcmask 261120   ;;  %v325_v5 = vmov 32.0   ;;  %vm238_vm5 = vcmask 257024  }
   0xc   : > { %s298_s17 = sshll.u32 %s392_s16, 2  ;;  %313 = vrcp.f32 %v325_v5  ;;  %v311_v26 = vld [vmem:[%s388_s2] ss:$0 sm:$0xff] }
   0xd   : > { %s188_s20 = scalar_lea.vmem %s386_s0, %s298_s17  ;;  %v312_v28 = vld [vmem:[%s389_s3] ss:$0 sm:$0xff]  ;;  %s192_s29 = scalar_lea.vmem %s390_s4, %s298_s17 }
   0xe   : > { %v193_v0 = vld [vmem:[%s188_s20] sm:$0xf] }
   0xf   : > { %v194_v2 = vunpack.c.l.bf16 %v193_v0 }
  0x11   : > { %v196_v3 = vadd.f32 %v195_v1, %v194_v2 }
  0x12   : > { %v314_v6 = vpop.eup %313 }
  0x13   : > { %v200_v4 = vsel %vm199_vm0, %v196_v3, 0.0  ;;  %v204_v7 = vmul.f32 32.0, %v314_v6  ;;  %vm208_vm1 = vweird.f32 %v314_v6 }
  0x14   : > { %201 = vadd.xlane.f32.xlu0 %v200_v4 }
  0x15   : > { %v205_v8 = vsub.f32 1.0, %v204_v7 }
  0x17   : > { %v206_v9 = vmul.f32 %v314_v6, %v205_v8 }
  0x19   : > { %v207_v10 = vadd.f32 %v314_v6, %v206_v9 }
  0x1b   : > { %v209_v11 = vsel %vm208_vm1, %v314_v6, %v207_v10 }
  0x87   : > { %v202_v12 = vpop.xlane.xlu0 %201 }
  0x88   : > { %v210_v13 = vmul.f32 %v209_v11, %v202_v12 }
  0x8a   : > { %v211_v14 = vsub.f32 %v196_v3, %v210_v13 }
  0x8c   : > { %v212_v15 = vmul.f32 %v211_v14, %v211_v14 }
  0x8e   : > { %v213_v16 = vsel %vm199_vm0, %v212_v15, 0.0 }
  0x8f   : > { %214 = vadd.xlane.f32.xlu0 %v213_v16 }
 0x102   : > { %v215_v17 = vpop.xlane.xlu0 %214 }
 0x103   : > { %v216_v18 = vmul.f32 %v215_v17, %v209_v11 }
 0x105   : > { %v217_v19 = vadd.f32 1e-12, %v216_v18 }
 0x107   : > { %315 = vrsqrt.f32 %v217_v19  ;;  %vm224_vm3 = vweird.f32 %v217_v19 }
 0x10d   : > { %v316_v20 = vpop.eup %315 }
 0x10e   : > { %v219_v21 = vmul.f32 %v316_v20, %v217_v19  ;;  %vm225_vm2 = vweird.f32 %v316_v20 }
 0x10f   : > { %vm226_vm4 = vmor %vm224_vm3, %vm225_vm2 }
 0x110   : > { %v220_v22 = vmul.f32 %v316_v20, %v219_v21 }
 0x112   : > { %v221_v23 = vmul.f32 0.5, %v220_v22 }
 0x114   : > { %v222_v24 = vsub.f32 1.5, %v221_v23 }
 0x116   : > { %v223_v25 = vmul.f32 %v316_v20, %v222_v24 }
 0x118   : > { %v227_v27 = vsel %vm226_vm4, %v316_v20, %v223_v25 }
 0x119   : > { %v228_v29 = vmul.f32 %v227_v27, %v211_v14 }
 0x11b   : > { %v232_v30 = vmul.f32 %v311_v26, %v228_v29 }
 0x11d   : > { %v236_v31 = vadd.f32 %v312_v28, %v232_v30 }
 0x11f   : > { %v237_v32 = vpack.c.bf16 %v236_v31, %v236_v31 }
 0x121   : > { %239 = vst.msk [vmem:[%s192_s29] sm:$0xf] %vm238_vm5, %v237_v32 }
 0x122 PF: > { %s14_s15 = sadd.s32 1, %s323_s15  }
 0x123   : > { %p11_p4 = scmp.ge.s32.totalorder %s14_s15, 4  }
 0x125   :  { %13 = sbr.rel (!%p11_p4) target bundleno = 1 (0x1), region = 66 }

// kernel: mlabel_forward.8
= control target key start
LH: loop header
LB: loop body
LE: loop exit
PB: predicated region body
PF: predicated region fallthrough
CT: control target
= control target key end

     0   :  { %s582_s24 = smov 0   ;;  %s639_s0 = inlined_call_operand.vmem [shape: bf16[2,8,32], index: 0, kind: input, shape index: {}]   ;;  %s640_s1 = inlined_call_operand.vmem [shape: bf16[32,64], index: 1, kind: input, shape index: {}]   ;;  %s641_s2 = inlined_call_operand.vmem [shape: f32[1,64], index: 2, kind: input, shape index: {}]   ;;  %s642_s3 = inlined_call_operand.vmem [shape: bf16[64,32], index: 3, kind: input, shape index: {}]   ;;  %s643_s4 = inlined_call_operand.vmem [shape: f32[1,32], index: 4, kind: input, shape index: {}]   ;;  %s644_s5 = inlined_call_operand.vmem [shape: f32[1,32], index: 5, kind: input, shape index: {}]   ;;  %s645_s6 = inlined_call_operand.vmem [shape: f32[1,32], index: 6, kind: input, shape index: {}]   ;;  %s646_s7 = inlined_call_operand.vmem [shape: bf16[2,8,32], index: 7, kind: output, shape index: {}]  }
   0x1 LB: > { %s473_s25 = sadd.s32 4294967295, %s539_s24   ;;  %p477_p0 = scmp.ge.s32.totalorder %s539_s24, 1  ;;  %s539_s24 = sphi %s582_s24, %s17_s24  }
   0x2   : > { %p236_p1 = scmp.lt.s32.totalorder %s539_s24, 3 }
   0x4   : > { %p237_p2 = pnand %p477_p0, %p236_p1 }
   0x5   : > { %p266_p3 = scmp.lt.s32.totalorder (!%p237_p2), %s473_s25, 1 }
   0x6   : > { %240 = sbr.rel (%p237_p2) target bundleno = 573 (0x23d), region = 48 }
   0xb   : > { %v509_v0 = vld [vmem:[%s640_s1 + $0x8] sm:$0xff]  ;;  %v508_v1 = vld [vmem:[%s640_s1] sm:$0xff]  ;;  %s648_s25 = smov (!%p266_p3, %s473_s25), 1  ;;  %vm296_vm0 = vcmask 261120   ;;  %v513_v3 = vld [vmem:[%s642_s3 + $0x18] sm:$0xff]  ;;  %vm359_vm1 = vcmask 523264  }
   0xc   : > { %306 = vmatpush.bf16.msra.mxu0 %v509_v0  ;;  %s478_s30 = sshll.u32 %s648_s25, 2  ;;  %367 = vmatpush.bf16.msra.mxu1 %v513_v3  ;;  %v512_v4 = vld [vmem:[%s642_s3 + $0x10] sm:$0xff]  ;;  %v511_v5 = vld [vmem:[%s642_s3 + $0x8] sm:$0xff]  ;;  %v510_v6 = vld [vmem:[%s642_s3] sm:$0xff]  ;;  %v541_v28 = vmov 32.0   ;;  %vm418_vm6 = vcmask 257024  }
   0xd   : > { %s269_s10 = scalar_lea.vmem %s639_s0, %s478_s30  ;;  %v523_v7 = vld [vmem:[%s641_s2] ss:$0 sm:$0xff]  ;;  %s273_s9 = scalar_lea.vmem %s646_s7, %s478_s30 }
   0xe   : > { %v275_v2 = vld [vmem:[%s269_s10] sm:$0xf] }
   0xf   : > { %v524_v21 = vld [vmem:[%s643_s4] ss:$0 sm:$0xff]  ;;  %v376_v22 = vunpack.c.l.bf16 %v275_v2 }
  0x10   : > { %307 = vmatpush.bf16.msra.mxu0 %v508_v1  ;;  %368 = vmatpush.bf16.msra.mxu1 %v512_v4  ;;  %v525_v49 = vld [vmem:[%s644_s5] ss:$0 sm:$0xff] }
  0x11   : > { %v526_v51 = vld [vmem:[%s645_s6] ss:$0 sm:$0xff] }
  0x13   : > { %488 = vmatmul.msk.bf16.vlgmr.msra.gmra.mxu0 %vm296_vm0, %v275_v2 }
  0x14   : > { %369 = vmatpush.bf16.msra.mxu1 %v511_v5 }
  0x18   : > { %370 = vmatpush.bf16.msra.mxu1 %v510_v6 }
  0x90   : > { %v309_v8 = vpop.f32.mrf.mxu0 }
  0x91   : > { %v310_v9 = vadd.f32 %v523_v7, %v309_v8 }
  0x93   : > { %v313_v10 = vmul.f32 %v310_v9, %v310_v9 }
  0x95   : > { %v314_v11 = vmul.f32 %v313_v10, %v310_v9 }
  0x97   : > { %v315_v12 = vmul.f32 0.044715, %v314_v11 }
  0x98   : > { %v311_v13 = vpop.f32.mrf.mxu0 }
  0x99   : > { %v316_v14 = vadd.f32 %v315_v12, %v310_v9 }
  0x9b   : > { %v317_v15 = vmul.f32 0.7978846, %v316_v14 }
  0x9d   : > { %527 = vtanh.f32 %v317_v15 }
  0x9e   : > { %529 = vrcp.f32 %v541_v28 }
  0xa3   : > { %v528_v16 = vpop.eup %527 }
  0xa4   : > { %v319_v17 = vadd.f32 1.0, %v528_v16  ;;  %v530_v29 = vpop.eup %529 }
  0xa5   : > { %v384_v30 = vmul.f32 32.0, %v530_v29  ;;  %vm388_vm2 = vweird.f32 %v530_v29 }
  0xa6   : > { %v320_v18 = vmul.f32 0.5, %v319_v17 }
  0xa7   : > { %v385_v31 = vsub.f32 1.0, %v384_v30 }
  0xa8   : > { %v321_v19 = vmul.f32 %v320_v18, %v310_v9 }
  0xa9   : > { %v386_v32 = vmul.f32 %v530_v29, %v385_v31 }
  0xaa   : > { %v322_v20 = vpack.c.bf16 %v321_v19, %v321_v19 }
  0xab   : > { %v387_v33 = vadd.f32 %v530_v29, %v386_v32 }
  0xac   : > { %505 = vmatmul.msk.bf16.vlgmr.msra.gmra.mxu1 %vm359_vm1, %v322_v20 }
  0xad   : > { %v389_v34 = vsel %vm388_vm2, %v530_v29, %v387_v33 }
 0x129   : > { %v372_v23 = vpop.f32.mrf.mxu1 }
 0x12a   : > { %v373_v24 = vadd.f32 %v524_v21, %v372_v23 }
 0x12c   : > { %v377_v25 = vadd.f32 %v376_v22, %v373_v24 }
 0x12e   : > { %v380_v26 = vsel %vm296_vm0, %v377_v25, 0.0 }
 0x12f   : > { %381 = vadd.xlane.f32.xlu0 %v380_v26 }
 0x131   : > { %v374_v27 = vpop.f32.mrf.mxu1 }
 0x1a2   : > { %v382_v35 = vpop.xlane.xlu0 %381 }
 0x1a3   : > { %v390_v36 = vmul.f32 %v389_v34, %v382_v35 }
 0x1a5   : > { %v391_v37 = vsub.f32 %v377_v25, %v390_v36 }
 0x1a7   : > { %v392_v38 = vmul.f32 %v391_v37, %v391_v37 }
 0x1a9   : > { %v393_v39 = vsel %vm296_vm0, %v392_v38, 0.0 }
 0x1aa   : > { %394 = vadd.xlane.f32.xlu0 %v393_v39 }
 0x21d   : > { %v395_v40 = vpop.xlane.xlu0 %394 }
 0x21e   : > { %v396_v41 = vmul.f32 %v395_v40, %v389_v34 }
 0x220   : > { %v397_v42 = vadd.f32 1e-12, %v396_v41 }
 0x222   : > { %531 = vrsqrt.f32 %v397_v42  ;;  %vm404_vm4 = vweird.f32 %v397_v42 }
 0x228   : > { %v532_v43 = vpop.eup %531 }
 0x229   : > { %v399_v44 = vmul.f32 %v532_v43, %v397_v42  ;;  %vm405_vm3 = vweird.f32 %v532_v43 }
 0x22a   : > { %vm406_vm5 = vmor %vm404_vm4, %vm405_vm3 }
 0x22b   : > { %v400_v45 = vmul.f32 %v532_v43, %v399_v44 }
 0x22d   : > { %v401_v46 = vmul.f32 0.5, %v400_v45 }
 0x22f   : > { %v402_v47 = vsub.f32 1.5, %v401_v46 }
 0x231   : > { %v403_v48 = vmul.f32 %v532_v43, %v402_v47 }
 0x233   : > { %v407_v50 = vsel %vm406_vm5, %v532_v43, %v403_v48 }
 0x234   : > { %v408_v52 = vmul.f32 %v407_v50, %v391_v37 }
 0x236   : > { %v412_v53 = vmul.f32 %v525_v49, %v408_v52 }
 0x238   : > { %v416_v54 = vadd.f32 %v526_v51, %v412_v53 }
 0x23a   : > { %v417_v55 = vpack.c.bf16 %v416_v54, %v416_v54 }
 0x23c   : > { %419 = vst.msk [vmem:[%s273_s9] sm:$0xf] %vm418_vm6, %v417_v55 }
 0x23d PF: > { %s17_s24 = sadd.s32 1, %s539_s24  }
 0x23e   : > { %p14_p4 = scmp.ge.s32.totalorder %s17_s24, 4  }
 0x240   :  { %16 = sbr.rel (!%p14_p4) target bundleno = 1 (0x1), region = 78 }

// kernel: mlabel_forward.7
= control target key start
LH: loop header
LB: loop body
LE: loop exit
PB: predicated region body
PF: predicated region fallthrough
CT: control target
= control target key end

     0   :  { %s841_s24 = smov 0   ;;  %s935_s0 = inlined_call_operand.vmem [shape: bf16[2,8,32], index: 0, kind: input, shape index: {}]   ;;  %s936_s1 = inlined_call_operand.vmem [shape: bf16[32,96], index: 1, kind: input, shape index: {}]   ;;  %s937_s2 = inlined_call_operand.vmem [shape: f32[1,96], index: 2, kind: input, shape index: {}]   ;;  %s938_s3 = inlined_call_operand.vmem [shape: bf16[32,32], index: 3, kind: input, shape index: {}]   ;;  %s939_s4 = inlined_call_operand.vmem [shape: f32[1,32], index: 4, kind: input, shape index: {}]   ;;  %s940_s5 = inlined_call_operand.vmem [shape: f32[1,32], index: 5, kind: input, shape index: {}]   ;;  %s941_s6 = inlined_call_operand.vmem [shape: f32[1,32], index: 6, kind: input, shape index: {}]   ;;  %s942_s7 = inlined_call_operand.vmem [shape: bf16[2,8,32], index: 7, kind: output, shape index: {}]  }
   0x1 LB: > { %s692_s25 = sadd.s32 4294967295, %s784_s24   ;;  %p696_p0 = scmp.ge.s32.totalorder %s784_s24, 1  ;;  %s784_s24 = sphi %s841_s24, %s17_s24  }
   0x2   : > { %p236_p1 = scmp.lt.s32.totalorder %s784_s24, 3 }
   0x4   : > { %p237_p2 = pnand %p696_p0, %p236_p1 }
   0x5   : > { %p266_p3 = scmp.lt.s32.totalorder (!%p237_p2), %s692_s25, 1  ;;  %s786_s13 = smov (!%p237_p2), 104  }
   0x6   : > { %240 = sbr.rel (%p237_p2) target bundleno = 1356 (0x54c), region = 48  ;;  %s787_s14 = smov (!%p237_p2), 120  }
   0x7   : > { %s788_s15 = smov (!%p237_p2), 96   ;;  %s789_s16 = smov (!%p237_p2), 80  }
   0x8   : > { %s790_s17 = smov (!%p237_p2), 72   ;;  %s791_s18 = smov (!%p237_p2), 88  }
   0x9   : > { %s792_s19 = smov (!%p237_p2), 112   ;;  %s793_s20 = smov (!%p237_p2), 64  }
   0xa   : > { %s794_s21 = smov (!%p237_p2), 40   ;;  %s795_s22 = smov (!%p237_p2), 56  }
   0xb   : > { %v728_v0 = vld [vmem:[%s936_s1 + $0x8] sm:$0xff]  ;;  %v727_v1 = vld [vmem:[%s936_s1] sm:$0xff]  ;;  %s944_s25 = smov (!%p266_p3, %s692_s25), 1  ;;  %vm297_vm0 = vcmask 261120   ;;  %vm320_vm1 = vcmask 64512   ;;  %vm357_vm2 = vcmask 1043456  }
   0xc   : > { %307 = vmatpush.bf16.msra.mxu0 %v728_v0  ;;  %s697_s30 = sshll.u32 %s944_s25, 2  ;;  %v754_v3 = vld [vmem:[%s937_s2] ss:$0 sm:$0xff]  ;;  %s796_s23 = smov 48   ;;  %vm555_vm3 = vcmask 130048   ;;  %vm557_vm4 = vcmask 195584  }
   0xd   : > { %s269_s10 = scalar_lea.vmem %s935_s0, %s697_s30  ;;  %s797_s26 = smov 8   ;;  %vm637_vm9 = vcmask 257024  }
   0xe   : > { %v863_v2 = vld [vmem:[%s269_s10] sm:$0xf]  ;;  %s798_s27 = smov 16   ;;  %s799_s28 = smov 24  }
  0x10   : > { %308 = vmatpush.bf16.msra.mxu0 %v727_v1 }
  0x13   : > { %707 = vmatmul.msk.bf16.vlgmr.msra.gmra.mxu0 %vm297_vm0, %v863_v2 }
  0x90   : > { %v310_v4 = vpop.f32.mrf.mxu0 }
  0x91   : > { %v311_v5 = vadd.f32 %v754_v3, %v310_v4 }
  0x93   : > { %v314_v6 = vpack.c.bf16 %v311_v5, %v311_v5 }
  0x95   : > { %v316_v7 = vunpack.c.l.b16 %v314_v6 }
  0x97   : > { %v870_v8 = vpack.c.b16 %v316_v7, %v316_v7 }
  0x98   : > { %v312_v9 = vpop.f32.mrf.mxu0 }
  0x99   : > { %486 = vrot.lane.b32.xlu2 %v870_v8, %s786_s13  ;;  %374 = vrot.lane.b32.xlu1 %v870_v8, %s787_s14 }
  0x9a   : > { %318 = vrot.lane.b32.xlu0 %v870_v8, %s788_s15 }
  0xa1   : > { %432 = vrot.lane.b32.xlu2 %v870_v8, %s789_s16  ;;  %488 = vrot.lane.b32.xlu1 %v870_v8, %s790_s17 }
  0xa2   : > { %376 = vrot.lane.b32.xlu0 %v870_v8, %s791_s18 }
  0xaa   : > { %430 = vrot.lane.b32.xlu0 %v870_v8, %s792_s19  ;;  %s273_s19 = scalar_lea.vmem %s942_s7, %s697_s30 }
  0xf3   : > { %v487_v10 = vpop.permute.xlu2 %486 }
  0xfb   : > { %v433_v11 = vpop.permute.xlu2 %432 }
  0xfc   : > { %v438_v12 = vsel %vm320_vm1, %v433_v11, 0 }
  0xfd   : > { %447 = vmatpush.bf16.xpose.msrb.mxu0 %v438_v12 }
 0x10b   : > { %v375_v13 = vpop.permute.xlu1 %374 }
 0x10c   : > { %v319_v14 = vpop.permute.xlu0 %318 }
 0x10d   : > { %v325_v15 = vsel %vm320_vm1, %v319_v14, 0 }
 0x10e   : > { %334 = vmatpush.bf16.xpose.msra.mxu1 %v325_v15 }
 0x113   : > { %v489_v16 = vpop.permute.xlu1 %488 }
 0x114   : > { %v377_v17 = vpop.permute.xlu0 %376  ;;  %v494_v18 = vsel %vm320_vm1, %v489_v16, 0 }
 0x115   : > { %708 = vmatmul.msk.bf16.vlgmr.msra.gmra.mxu1 %vm320_vm1, %v314_v6  ;;  %v382_v19 = vsel %vm320_vm1, %v377_v17, 0 }
 0x116   : > { %391 = vmatpush.bf16.xpose.msra.mxu3 %v382_v19 }
 0x11c   : > { %v431_v20 = vpop.permute.xlu0 %430 }
 0x11d   : > { %710 = vmatmul.msk.bf16.vlgmr.msra.gmra.mxu3 %vm320_vm1, %v375_v13  ;;  %712 = vmatmul.msk.bf16.vlgmr.msrb.gmra.mxu0 %vm320_vm1, %v431_v20 }
 0x11e   : > { %503 = vmatpush.bf16.xpose.msrb.mxu3 %v494_v18 }
 0x12d   : > { %714 = vmatmul.msk.bf16.vlgmr.msrb.gmra.mxu3 %vm320_vm1, %v487_v10 }
 0x192   : > { %v336_v21 = vpop.f32.mrf.mxu1 }
 0x193   : > { %v340_v22 = vsel %vm320_vm1, %v336_v21, -inf }
 0x194   : > { %341 = vmax.xlane.f32.xlu1 %v340_v22  ;;  %v730_v22 = vld [vmem:[%s938_s3 + $0x8] sm:$0xff] }
 0x195   : > { %589 = vmatpush.bf16.msra.mxu0 %v730_v22 }
 0x19a   : > { %v338_v23 = vpop.f32.mrf.mxu1  ;;  %v449_v24 = vpop.f32.mrf.mxu0 }
 0x19b   : > { %v453_v29 = vsel %vm320_vm1, %v449_v24, -inf  ;;  %v729_v23 = vld [vmem:[%s938_s3] sm:$0xff] }
 0x19c   : > { %590 = vmatpush.bf16.msra.mxu0 %v729_v23 }
 0x1a0   : > { %v393_v25 = vpop.f32.mrf.mxu3 }
 0x1a1   : > { %v397_v26 = vsel %vm320_vm1, %v393_v25, -inf }
 0x1a2   : > { %398 = vmax.xlane.f32.xlu2 %v397_v26  ;;  %v451_v27 = vpop.f32.mrf.mxu0 }
 0x1a8   : > { %v395_v28 = vpop.f32.mrf.mxu3 }
 0x1aa   : > { %454 = vmax.xlane.f32.xlu2 %v453_v29 }
 0x1b0   : > { %v505_v30 = vpop.f32.mrf.mxu3 }
 0x1b1   : > { %v509_v31 = vsel %vm320_vm1, %v505_v30, -inf }
 0x1b2   : > { %510 = vmax.xlane.f32.xlu0 %v509_v31  ;;  %v755_v31 = vld [vmem:[%s939_s4] ss:$0 sm:$0xff] }
 0x1b8   : > { %v507_v32 = vpop.f32.mrf.mxu3 }
 0x1b9   : > { %v276_v32 = vunpack.c.l.bf16 %v863_v2 }
 0x1c2   : > { %352 = vrot.lane.b32.xlu2 %v870_v8, %s793_s20 }
 0x1ca   : > { %521 = vrot.lane.b32.xlu2 %v870_v8, %s794_s21 }
 0x207   : > { %v342_v33 = vpop.xlane.xlu1 %341 }
 0x208   : > { %v343_v34 = vsub.f32 %v336_v21, %v342_v33 }
 0x20a   : > { %v344_v35 = vmul.f32 1.442695, %v343_v34 }
 0x20c   : > { %758 = vpow2.f32 %v344_v35 }
 0x212   : > { %v759_v36 = vpop.eup %758 }
 0x213   : > { %v346_v37 = vsel %vm320_vm1, %v759_v36, 0.0 }
 0x214   : > { %347 = vadd.xlane.f32.xlu1 %v346_v37 }
 0x215   : > { %v399_v38 = vpop.xlane.xlu2 %398 }
 0x216   : > { %v400_v41 = vsub.f32 %v393_v25, %v399_v38  ;;  %v800_v38 = vmov 32.0  }
 0x218   : > { %v401_v43 = vmul.f32 1.442695, %v400_v41 }
 0x21d   : > { %v455_v39 = vpop.xlane.xlu2 %454 }
 0x21e   : > { %v456_v40 = vsub.f32 %v449_v24, %v455_v39 }
 0x220   : > { %v457_v42 = vmul.f32 1.442695, %v456_v40 }
 0x222   : > { %760 = vpow2.f32 %v457_v42 }
 0x223   : > { %762 = vpow2.f32 %v401_v43 }
 0x225   : > { %v353_v44 = vpop.permute.xlu2 %352  ;;  %v511_v45 = vpop.xlane.xlu0 %510 }
 0x226   : > { %v359_v46 = vsel %vm357_vm2, %v353_v44, 0  ;;  %v512_v48 = vsub.f32 %v505_v30, %v511_v45 }
 0x227   : > { %368 = vmatpush.bf16.msra.mxu2 %v359_v46 }
 0x228   : > { %v761_v47 = vpop.eup %760  ;;  %v513_v50 = vmul.f32 1.442695, %v512_v48 }
 0x229   : > { %v459_v49 = vsel %vm320_vm1, %v761_v47, 0.0  ;;  %v763_v51 = vpop.eup %762 }
 0x22a   : > { %460 = vadd.xlane.f32.xlu0 %v459_v49  ;;  %764 = vpow2.f32 %v513_v50  ;;  %v403_v52 = vsel %vm320_vm1, %v763_v51, 0.0 }
 0x22d   : > { %409 = vrot.lane.b32.xlu1 %v870_v8, %s795_s22  ;;  %v522_v60 = vpop.permute.xlu2 %521 }
 0x22e   : > { %v527_v63 = vsel %vm357_vm2, %v522_v60, 0  ;;  %v757_v60 = vld [vmem:[%s941_s6] ss:$0 sm:$0xff] }
 0x230   : > { %v765_v53 = vpop.eup %764 }
 0x231   : > { %v515_v54 = vsel %vm320_vm1, %v765_v53, 0.0 }
 0x232   : > { %404 = vadd.xlane.f32.xlu0 %v403_v52 }
 0x23a   : > { %516 = vadd.xlane.f32.xlu0 %v515_v54 }
 0x24e   : > { %465 = vrot.lane.b32.xlu0 %v870_v8, %s796_s23 }
 0x287   : > { %v348_v55 = vpop.xlane.xlu1 %347 }
 0x288   : > { %766 = vrcp.f32 %v348_v55 }
 0x28e   : > { %v767_v56 = vpop.eup %766 }
 0x28f   : > { %v350_v57 = vmul.f32 %v767_v56, %v759_v36 }
 0x291   : > { %v351_v58 = vpack.c.bf16 %v350_v57, %v350_v57 }
 0x293   : > { %709 = vmatmul.msk.bf16.vlgmr.msra.gmra.mxu2 %vm320_vm1, %v351_v58  ;;  %v756_v58 = vld [vmem:[%s940_s5] ss:$0 sm:$0xff] }
 0x29d   : > { %v461_v59 = vpop.xlane.xlu0 %460 }
 0x29f   : > { %v410_v61 = vpop.permute.xlu1 %409 }
 0x2a0   : > { %v415_v62 = vsel %vm357_vm2, %v410_v61, 0 }
 0x2a1   : > { %424 = vmatpush.bf16.msrb.mxu2 %v415_v62 }
 0x2a5   : > { %536 = vmatpush.bf16.msra.mxu2 %v527_v63  ;;  %v405_v0 = vpop.xlane.xlu0 %404 }
 0x2a6   : > { %768 = vrcp.f32 %v405_v0 }
 0x2ac   : > { %v769_v1 = vpop.eup %768 }
 0x2ad   : > { %v407_v3 = vmul.f32 %v769_v1, %v763_v51  ;;  %v517_v4 = vpop.xlane.xlu0 %516 }
 0x2ae   : > { %770 = vrcp.f32 %v517_v4 }
 0x2af   : > { %v408_v5 = vpack.c.bf16 %v407_v3, %v407_v3  ;;  %772 = vrcp.f32 %v461_v59 }
 0x2b0   : > { %774 = vrcp.f32 %v800_v38 }
 0x2b1   : > { %711 = vmatmul.msk.bf16.vlgmr.msrb.gmra.mxu2 %vm320_vm1, %v408_v5 }
 0x2b4   : > { %v771_v6 = vpop.eup %770 }
 0x2b5   : > { %v519_v7 = vmul.f32 %v771_v6, %v765_v53  ;;  %v773_v8 = vpop.eup %772 }
 0x2b6   : > { %v463_v9 = vmul.f32 %v773_v8, %v761_v47  ;;  %v775_v39 = vpop.eup %774 }
 0x2b7   : > { %v520_v10 = vpack.c.bf16 %v519_v7, %v519_v7  ;;  %v603_v40 = vmul.f32 32.0, %v775_v39  ;;  %vm607_vm5 = vweird.f32 %v775_v39 }
 0x2b8   : > { %v464_v13 = vpack.c.bf16 %v463_v9, %v463_v9 }
 0x2b9   : > { %v604_v41 = vsub.f32 1.0, %v603_v40 }
 0x2bb   : > { %v605_v42 = vmul.f32 %v775_v39, %v604_v41 }
 0x2bd   : > { %v606_v43 = vadd.f32 %v775_v39, %v605_v42 }
 0x2bf   : > { %v608_v44 = vsel %vm607_vm5, %v775_v39, %v606_v43 }
 0x2c0   : > { %v466_v11 = vpop.permute.xlu0 %465 }
 0x2c1   : > { %715 = vmatmul.msk.bf16.vlgmr.msra.gmra.mxu2 %vm320_vm1, %v520_v10  ;;  %v471_v12 = vsel %vm357_vm2, %v466_v11, 0 }
 0x2c2   : > { %480 = vmatpush.bf16.msrb.mxu1 %v471_v12 }
 0x2c5   : > { %713 = vmatmul.msk.bf16.vlgmr.msrb.gmra.mxu1 %vm320_vm1, %v464_v13 }
 0x316   : > { %v370_v14 = vpop.f32.mrf.mxu2 }
 0x31e   : > { %v372_v15 = vpop.f32.mrf.mxu2 }
 0x334   : > { %v426_v16 = vpop.f32.mrf.mxu2 }
 0x335   : > { %543 = vrot.lane.b32.xlu1 %v426_v16, %s797_s26 }
 0x33c   : > { %v428_v17 = vpop.f32.mrf.mxu2 }
 0x342   : > { %v482_v18 = vpop.f32.mrf.mxu1 }
 0x343   : > { %547 = vrot.lane.b32.xlu2 %v482_v18, %s798_s27 }
 0x344   : > { %v538_v19 = vpop.f32.mrf.mxu2 }
 0x345   : > { %551 = vrot.lane.b32.xlu1 %v538_v19, %s799_s28 }
 0x34a   : > { %v484_v20 = vpop.f32.mrf.mxu1 }
 0x34c   : > { %v540_v21 = vpop.f32.mrf.mxu2 }
 0x39d   : > { %v548_v26 = vpop.permute.xlu2 %547 }
 0x3a7   : > { %v544_v24 = vpop.permute.xlu1 %543 }
 0x3a8   : > { %v554_v25 = vsel %vm320_vm1, %v370_v14, %v544_v24 }
 0x3a9   : > { %v556_v28 = vsel %vm555_vm3, %v554_v25, %v548_v26 }
 0x3b7   : > { %v552_v27 = vpop.permute.xlu1 %551 }
 0x3b8   : > { %v558_v29 = vsel %vm557_vm4, %v556_v28, %v552_v27 }
 0x3b9   : > { %v559_v30 = vpack.c.bf16 %v558_v29, %v558_v29 }
 0x3bb   : > { %724 = vmatmul.msk.bf16.vlgmr.msra.gmra.mxu0 %vm297_vm0, %v559_v30 }
 0x438   : > { %v592_v33 = vpop.f32.mrf.mxu0 }
 0x439   : > { %v593_v34 = vadd.f32 %v755_v31, %v592_v33 }
 0x43b   : > { %v596_v35 = vadd.f32 %v593_v34, %v276_v32 }
 0x43d   : > { %v599_v36 = vsel %vm297_vm0, %v596_v35, 0.0 }
 0x43e   : > { %600 = vadd.xlane.f32.xlu2 %v599_v36 }
 0x440   : > { %v594_v37 = vpop.f32.mrf.mxu0 }
 0x4b1   : > { %v601_v45 = vpop.xlane.xlu2 %600 }
 0x4b2   : > { %v609_v46 = vmul.f32 %v608_v44, %v601_v45 }
 0x4b4   : > { %v610_v47 = vsub.f32 %v596_v35, %v609_v46 }
 0x4b6   : > { %v611_v2 = vmul.f32 %v610_v47, %v610_v47 }
 0x4b8   : > { %v612_v48 = vsel %vm297_vm0, %v611_v2, 0.0 }
 0x4b9   : > { %613 = vadd.xlane.f32.xlu1 %v612_v48 }
 0x52c   : > { %v614_v49 = vpop.xlane.xlu1 %613 }
 0x52d   : > { %v615_v50 = vmul.f32 %v614_v49, %v608_v44 }
 0x52f   : > { %v616_v51 = vadd.f32 1e-12, %v615_v50 }
 0x531   : > { %776 = vrsqrt.f32 %v616_v51  ;;  %vm623_vm7 = vweird.f32 %v616_v51 }
 0x537   : > { %v777_v52 = vpop.eup %776 }
 0x538   : > { %v618_v53 = vmul.f32 %v777_v52, %v616_v51  ;;  %vm624_vm6 = vweird.f32 %v777_v52 }
 0x539   : > { %vm625_vm8 = vmor %vm623_vm7, %vm624_vm6 }
 0x53a   : > { %v619_v54 = vmul.f32 %v777_v52, %v618_v53 }
 0x53c   : > { %v620_v55 = vmul.f32 0.5, %v619_v54 }
 0x53e   : > { %v621_v56 = vsub.f32 1.5, %v620_v55 }
 0x540   : > { %v622_v57 = vmul.f32 %v777_v52, %v621_v56 }
 0x542   : > { %v626_v59 = vsel %vm625_vm8, %v777_v52, %v622_v57 }
 0x543   : > { %v627_v61 = vmul.f32 %v626_v59, %v610_v47 }
 0x545   : > { %v631_v62 = vmul.f32 %v756_v58, %v627_v61 }
 0x547   : > { %v635_v63 = vadd.f32 %v757_v60, %v631_v62 }
 0x549   : > { %v636_v0 = vpack.c.bf16 %v635_v63, %v635_v63 }
 0x54b   : > { %638 = vst.msk [vmem:[%s273_s19] sm:$0xf] %vm637_vm9, %v636_v0 }
 0x54c PF: > { %s17_s24 = sadd.s32 1, %s784_s24  }
 0x54d   : > { %p14_p4 = scmp.ge.s32.totalorder %s17_s24, 4  }
 0x54f   :  { %16 = sbr.rel (!%p14_p4) target bundleno = 1 (0x1), region = 78 }

</bundles_post_ra>
